<compile_context>
chip_gen: v6e
topology: v6e:2x2x1
jax: 0.10.0
libtpu: 0.0.40
codegen_flags: <defaults>
</compile_context>

<pallas_src>
import numpy as np
import jax
import jax.numpy as jnp
from jax.experimental import pallas as pl
from jax.experimental.pallas import tpu as pltpu


# ---------------------------------------------------------------------------
# Host-side construction of the 1-D bilinear x2 interpolation matrices.
# ---------------------------------------------------------------------------
def _bilinear_1d_matrix(n_in: int) -> np.ndarray:
    """(2*n_in, n_in) matrix for 1-D bilinear x2 upsampling.

    Matches nn.Upsample(scale_factor=2, mode='bilinear', align_corners=False):
    half-pixel centers, coordinates clamped at the borders.
    """
    n_out = 2 * n_in
    dst = np.arange(n_out, dtype=np.int64)
    src = (dst.astype(np.float64) + 0.5) / 2.0 - 0.5
    src = np.clip(src, 0.0, float(n_in - 1))
    i0 = np.floor(src).astype(np.int64)
    i1 = np.minimum(i0 + 1, n_in - 1)
    frac = src - i0
    mat = np.zeros((n_out, n_in), dtype=np.float64)
    mat[dst, i0] += 1.0 - frac
    mat[dst, i1] += frac
    return mat.astype(np.float32)


# ---------------------------------------------------------------------------
# Fused kernel: 1x1 conv (VPU, first) + separable bilinear x2 upsample (MXU).
# ---------------------------------------------------------------------------
def _upsample_conv_kernel(x_ref, awt_ref, ah_ref, w_ref, o_ref, z_scr):
    # x_ref  : (BT, Cin, H, W)     VMEM  input batch tile
    # awt_ref: (W, 2W)             VMEM  width interpolation (resident)
    # ah_ref : (2H, H)             VMEM  height interpolation (resident)
    # w_ref  : (Cout, Cin)         SMEM  1x1 conv weight (scalar reads)
    # o_ref  : (BT, Cout, 2H, 2W)  VMEM  output batch tile
    # z_scr  : (BT, Cout, H, W)    VMEM  f32 scratch (conv-first result)
    bt, cin, H, W = x_ref.shape
    cout = o_ref.shape[1]
    W2 = 2 * W

    x = x_ref[...].astype(jnp.float32)
    x_c = [x[:, c] for c in range(cin)]        # hoisted channel slices

    # ---- 1x1 conv FIRST (channel mix) on the VPU --------------------------
    # Cout*Cin scalar-broadcast FMAs; exact f32, no K=Cin matmul on the MXU.
    for o in range(cout):
        acc = w_ref[o, 0] * x_c[0]
        for c in range(1, cin):
            acc = acc + w_ref[o, c] * x_c[c]
        z_scr[:, o] = acc                      # (BT, H, W)

    # ---- separable bilinear x2 upsample on the MXU -------------------------
    # Width: ONE matmul with M = BT*Cout*H rows (high MXU row occupancy).
    z = z_scr[...].reshape(bt * cout * H, W)
    y1 = jnp.dot(z, awt_ref[...], preferred_element_type=jnp.float32)
    y1 = y1.reshape(bt * cout, H, W2)

    # Height: tiny (2H, H) @ (H, 2W) matmul per image; BT*Cout is small so the
    # loop is statically unrolled.  (For large BT*Cout fold into a batched
    # einsum 'bph,bhq->bpq'.)
    ah = ah_ref[...]
    for b in range(bt * cout):
        n, o = divmod(b, cout)
        o_ref[n, o] = jnp.dot(
            ah, y1[b], preferred_element_type=jnp.float32
        ).astype(o_ref.dtype)


def upsample_forward(x_nchw, w_conv, *, batch_tile=None):
    """x_nchw: (N, Cin, H, W); w_conv: (Cout, Cin)  ->  (N, Cout, 2H, 2W).

    Equivalent to UpSample.forward (the PyTorch conv weight (Cout, Cin, 1, 1)
    should be squeezed to (Cout, Cin) by the caller).
    """
    N, Cin, H, W = x_nchw.shape
    Cout = w_conv.shape[0]
    H2, W2 = 2 * H, 2 * W

    bt = N if batch_tile is None else batch_tile
    assert N % bt == 0, (N, bt)

    # Tiny separable interpolation matrices (a few KB), trace-time constants.
    a_h = jnp.asarray(_bilinear_1d_matrix(H))        # (2H, H)
    a_w_t = jnp.asarray(_bilinear_1d_matrix(W).T)    # (W, 2W)

    itemsize = jnp.dtype(x_nchw.dtype).itemsize
    flops = (2 * N * Cout * Cin * H * W              # 1x1 conv (VPU)
             + 2 * (N * Cout * H) * W * W2           # width upsample (MXU)
             + 2 * (N * Cout) * H2 * H * W2)         # height upsample (MXU)
    bytes_accessed = (N * Cin * H * W * itemsize
                      + N * Cout * H2 * W2 * itemsize
                      + (a_h.size + a_w_t.size + w_conv.size) * 4)

    out = pl.pallas_call(
        _upsample_conv_kernel,
        out_shape=jax.ShapeDtypeStruct((N, Cout, H2, W2), x_nchw.dtype),
        grid=(N // bt,),
        in_specs=[
            pl.BlockSpec((bt, Cin, H, W), lambda i: (i, 0, 0, 0)),
            pl.BlockSpec((W, W2), lambda i: (0, 0)),    # resident, no re-DMA
            pl.BlockSpec((H2, H), lambda i: (0, 0)),    # resident, no re-DMA
            pl.BlockSpec(memory_space=pltpu.MemorySpace.SMEM),
        ],
        out_specs=pl.BlockSpec((bt, Cout, H2, W2), lambda i: (i, 0, 0, 0)),
        scratch_shapes=[pltpu.VMEM((bt, Cout, H, W), jnp.float32)],
        compiler_params=pltpu.CompilerParams(
            dimension_semantics=("parallel",),  # multi-step grids split over v7x TCs
        ),
        cost_estimate=pl.CostEstimate(
            flops=flops, transcendentals=0, bytes_accessed=bytes_accessed),
    )(x_nchw, a_w_t, a_h, w_conv)
    return out


upsample_forward_jit = jax.jit(upsample_forward, static_argnames=("batch_tile",))


if __name__ == "__main__":
    key = jax.random.PRNGKey(0)
    k_x, k_w = jax.random.split(key)

    # UpSample(in_channels=4, s_factor=4): Conv2d(8 -> 4, 1x1, bias=False)
    N, in_channels, s_factor, H, W = 2, 4, 4, 16, 16
    Cin = in_channels + s_factor   # 8
    Cout = in_channels             # 4

    x = jax.random.normal(k_x, (N, Cin, H, W), jnp.float32)
    # PyTorch weight (Cout, Cin, 1, 1) squeezed to (Cout, Cin).
    w_conv = 0.1 * jax.random.normal(k_w, (Cout, Cin), jnp.float32)

    out = upsample_forward_jit(x, w_conv)
    jax.block_until_ready(out)

    assert out.shape == (N, Cout, 2 * H, 2 * W), out.shape
    assert bool(jnp.all(jnp.isfinite(out)))

    # Float64 numpy reference (identical bilinear semantics).
    x64 = np.asarray(x, dtype=np.float64)
    w64 = np.asarray(w_conv, dtype=np.float64)
    ah64 = _bilinear_1d_matrix(H).astype(np.float64)   # (2H, H)
    aw64 = _bilinear_1d_matrix(W).astype(np.float64)   # (2W, W)
    ref = np.einsum("oc,ph,qw,nchw->nopq", w64, ah64, aw64, x64)
    max_err = float(np.max(np.abs(np.asarray(out, dtype=np.float64) - ref)))
    # Conv mix is exact f32 on the VPU; the two MXU contractions truncate the
    # activations to bf16 passes (coefficients are bf16-exact): expect ~1e-3.
    assert max_err < 2e-2, max_err

    print("KERNEL_OK")
</pallas_src>

<mosaic_0001>
module attributes {stable_mosaic.version = 11 : i64} {
  func.func @_upsample_conv_kernel(%arg0: i32, %arg1: memref<2x8x16x16xf32, #tpu.memory_space<vmem>>, %arg2: memref<16x32xf32, #tpu.memory_space<vmem>>, %arg3: memref<32x16xf32, #tpu.memory_space<vmem>>, %arg4: memref<4x8xf32, #tpu.memory_space<smem>>, %arg5: memref<2x4x32x32xf32, #tpu.memory_space<vmem>>, %arg6: memref<2x4x16x16xf32, #tpu.memory_space<vmem>>) attributes {dimension_semantics = [#tpu.dimension_semantics<parallel>], iteration_bounds = array<i64: 1>, scalar_prefetch = 0 : i64, scratch_operands = 1 : i64, tpu.core_type = #tpu.core_type<tc>, window_params = [{transform_indices = @transform_0, window_bounds = array<i64: 2, 8, 16, 16>}, {pipeline_mode = #tpu.pipeline_mode<synchronous>, transform_indices = @transform_1, window_bounds = array<i64: 16, 32>}, {pipeline_mode = #tpu.pipeline_mode<synchronous>, transform_indices = @transform_2, window_bounds = array<i64: 32, 16>}, {transform_indices = @transform_3, window_bounds = array<i64: 4, 8>}, {transform_indices = @transform_4, window_bounds = array<i64: 2, 4, 32, 32>}]} {
    %c0 = arith.constant 0 : index
    %c0_0 = arith.constant 0 : index
    %c0_1 = arith.constant 0 : index
    %c0_2 = arith.constant 0 : index
    %0 = vector.load %arg1[%c0, %c0_0, %c0_1, %c0_2] : memref<2x8x16x16xf32, #tpu.memory_space<vmem>>, vector<2x8x16x16xf32>
    %1 = vector.extract_strided_slice %0 {offsets = [0, 0, 0, 0], sizes = [2, 1, 16, 16], strides = [1, 1, 1, 1]} : vector<2x8x16x16xf32> to vector<2x1x16x16xf32>
    %2 = vector.shape_cast %1 : vector<2x1x16x16xf32> to vector<2x16x16xf32>
    %3 = vector.extract_strided_slice %0 {offsets = [0, 1, 0, 0], sizes = [2, 1, 16, 16], strides = [1, 1, 1, 1]} : vector<2x8x16x16xf32> to vector<2x1x16x16xf32>
    %4 = vector.shape_cast %3 : vector<2x1x16x16xf32> to vector<2x16x16xf32>
    %5 = vector.extract_strided_slice %0 {offsets = [0, 2, 0, 0], sizes = [2, 1, 16, 16], strides = [1, 1, 1, 1]} : vector<2x8x16x16xf32> to vector<2x1x16x16xf32>
    %6 = vector.shape_cast %5 : vector<2x1x16x16xf32> to vector<2x16x16xf32>
    %7 = vector.extract_strided_slice %0 {offsets = [0, 3, 0, 0], sizes = [2, 1, 16, 16], strides = [1, 1, 1, 1]} : vector<2x8x16x16xf32> to vector<2x1x16x16xf32>
    %8 = vector.shape_cast %7 : vector<2x1x16x16xf32> to vector<2x16x16xf32>
    %9 = vector.extract_strided_slice %0 {offsets = [0, 4, 0, 0], sizes = [2, 1, 16, 16], strides = [1, 1, 1, 1]} : vector<2x8x16x16xf32> to vector<2x1x16x16xf32>
    %10 = vector.shape_cast %9 : vector<2x1x16x16xf32> to vector<2x16x16xf32>
    %11 = vector.extract_strided_slice %0 {offsets = [0, 5, 0, 0], sizes = [2, 1, 16, 16], strides = [1, 1, 1, 1]} : vector<2x8x16x16xf32> to vector<2x1x16x16xf32>
    %12 = vector.shape_cast %11 : vector<2x1x16x16xf32> to vector<2x16x16xf32>
    %13 = vector.extract_strided_slice %0 {offsets = [0, 6, 0, 0], sizes = [2, 1, 16, 16], strides = [1, 1, 1, 1]} : vector<2x8x16x16xf32> to vector<2x1x16x16xf32>
    %14 = vector.shape_cast %13 : vector<2x1x16x16xf32> to vector<2x16x16xf32>
    %15 = vector.extract_strided_slice %0 {offsets = [0, 7, 0, 0], sizes = [2, 1, 16, 16], strides = [1, 1, 1, 1]} : vector<2x8x16x16xf32> to vector<2x1x16x16xf32>
    %16 = vector.shape_cast %15 : vector<2x1x16x16xf32> to vector<2x16x16xf32>
    %c0_3 = arith.constant 0 : index
    %c0_4 = arith.constant 0 : index
    %17 = memref.load %arg4[%c0_3, %c0_4] : memref<4x8xf32, #tpu.memory_space<smem>>
    %18 = vector.broadcast %17 : f32 to vector<2x16x16xf32>
    %19 = arith.mulf %18, %2 : vector<2x16x16xf32>
    %c0_5 = arith.constant 0 : index
    %c1 = arith.constant 1 : index
    %20 = memref.load %arg4[%c0_5, %c1] : memref<4x8xf32, #tpu.memory_space<smem>>
    %21 = vector.broadcast %20 : f32 to vector<2x16x16xf32>
    %22 = arith.mulf %21, %4 : vector<2x16x16xf32>
    %23 = arith.addf %19, %22 : vector<2x16x16xf32>
    %c0_6 = arith.constant 0 : index
    %c2 = arith.constant 2 : index
    %24 = memref.load %arg4[%c0_6, %c2] : memref<4x8xf32, #tpu.memory_space<smem>>
    %25 = vector.broadcast %24 : f32 to vector<2x16x16xf32>
    %26 = arith.mulf %25, %6 : vector<2x16x16xf32>
    %27 = arith.addf %23, %26 : vector<2x16x16xf32>
    %c0_7 = arith.constant 0 : index
    %c3 = arith.constant 3 : index
    %28 = memref.load %arg4[%c0_7, %c3] : memref<4x8xf32, #tpu.memory_space<smem>>
    %29 = vector.broadcast %28 : f32 to vector<2x16x16xf32>
    %30 = arith.mulf %29, %8 : vector<2x16x16xf32>
    %31 = arith.addf %27, %30 : vector<2x16x16xf32>
    %c0_8 = arith.constant 0 : index
    %c4 = arith.constant 4 : index
    %32 = memref.load %arg4[%c0_8, %c4] : memref<4x8xf32, #tpu.memory_space<smem>>
    %33 = vector.broadcast %32 : f32 to vector<2x16x16xf32>
    %34 = arith.mulf %33, %10 : vector<2x16x16xf32>
    %35 = arith.addf %31, %34 : vector<2x16x16xf32>
    %c0_9 = arith.constant 0 : index
    %c5 = arith.constant 5 : index
    %36 = memref.load %arg4[%c0_9, %c5] : memref<4x8xf32, #tpu.memory_space<smem>>
    %37 = vector.broadcast %36 : f32 to vector<2x16x16xf32>
    %38 = arith.mulf %37, %12 : vector<2x16x16xf32>
    %39 = arith.addf %35, %38 : vector<2x16x16xf32>
    %c0_10 = arith.constant 0 : index
    %c6 = arith.constant 6 : index
    %40 = memref.load %arg4[%c0_10, %c6] : memref<4x8xf32, #tpu.memory_space<smem>>
    %41 = vector.broadcast %40 : f32 to vector<2x16x16xf32>
    %42 = arith.mulf %41, %14 : vector<2x16x16xf32>
    %43 = arith.addf %39, %42 : vector<2x16x16xf32>
    %c0_11 = arith.constant 0 : index
    %c7 = arith.constant 7 : index
    %44 = memref.load %arg4[%c0_11, %c7] : memref<4x8xf32, #tpu.memory_space<smem>>
    %45 = vector.broadcast %44 : f32 to vector<2x16x16xf32>
    %46 = arith.mulf %45, %16 : vector<2x16x16xf32>
    %47 = arith.addf %43, %46 : vector<2x16x16xf32>
    %c0_12 = arith.constant 0 : index
    %c0_13 = arith.constant 0 : index
    %c0_14 = arith.constant 0 : index
    %c0_15 = arith.constant 0 : index
    %48 = vector.load %arg6[%c0_12, %c0_13, %c0_14, %c0_15] : memref<2x4x16x16xf32, #tpu.memory_space<vmem>>, vector<2x1x16x16xf32>
    %49 = vector.shape_cast %48 : vector<2x1x16x16xf32> to vector<2x16x16xf32>
    %50 = vector.shape_cast %47 : vector<2x16x16xf32> to vector<2x1x16x16xf32>
    tpu.vector_store %arg6[%c0_12, %c0_13, %c0_14, %c0_15], %50 {strides = array<i32>} : memref<2x4x16x16xf32, #tpu.memory_space<vmem>>, vector<2x1x16x16xf32>,
    %c1_16 = arith.constant 1 : index
    %c0_17 = arith.constant 0 : index
    %51 = memref.load %arg4[%c1_16, %c0_17] : memref<4x8xf32, #tpu.memory_space<smem>>
    %52 = vector.broadcast %51 : f32 to vector<2x16x16xf32>
    %53 = arith.mulf %52, %2 : vector<2x16x16xf32>
    %c1_18 = arith.constant 1 : index
    %c1_19 = arith.constant 1 : index
    %54 = memref.load %arg4[%c1_18, %c1_19] : memref<4x8xf32, #tpu.memory_space<smem>>
    %55 = vector.broadcast %54 : f32 to vector<2x16x16xf32>
    %56 = arith.mulf %55, %4 : vector<2x16x16xf32>
    %57 = arith.addf %53, %56 : vector<2x16x16xf32>
    %c1_20 = arith.constant 1 : index
    %c2_21 = arith.constant 2 : index
    %58 = memref.load %arg4[%c1_20, %c2_21] : memref<4x8xf32, #tpu.memory_space<smem>>
    %59 = vector.broadcast %58 : f32 to vector<2x16x16xf32>
    %60 = arith.mulf %59, %6 : vector<2x16x16xf32>
    %61 = arith.addf %57, %60 : vector<2x16x16xf32>
    %c1_22 = arith.constant 1 : index
    %c3_23 = arith.constant 3 : index
    %62 = memref.load %arg4[%c1_22, %c3_23] : memref<4x8xf32, #tpu.memory_space<smem>>
    %63 = vector.broadcast %62 : f32 to vector<2x16x16xf32>
    %64 = arith.mulf %63, %8 : vector<2x16x16xf32>
    %65 = arith.addf %61, %64 : vector<2x16x16xf32>
    %c1_24 = arith.constant 1 : index
    %c4_25 = arith.constant 4 : index
    %66 = memref.load %arg4[%c1_24, %c4_25] : memref<4x8xf32, #tpu.memory_space<smem>>
    %67 = vector.broadcast %66 : f32 to vector<2x16x16xf32>
    %68 = arith.mulf %67, %10 : vector<2x16x16xf32>
    %69 = arith.addf %65, %68 : vector<2x16x16xf32>
    %c1_26 = arith.constant 1 : index
    %c5_27 = arith.constant 5 : index
    %70 = memref.load %arg4[%c1_26, %c5_27] : memref<4x8xf32, #tpu.memory_space<smem>>
    %71 = vector.broadcast %70 : f32 to vector<2x16x16xf32>
    %72 = arith.mulf %71, %12 : vector<2x16x16xf32>
    %73 = arith.addf %69, %72 : vector<2x16x16xf32>
    %c1_28 = arith.constant 1 : index
    %c6_29 = arith.constant 6 : index
    %74 = memref.load %arg4[%c1_28, %c6_29] : memref<4x8xf32, #tpu.memory_space<smem>>
    %75 = vector.broadcast %74 : f32 to vector<2x16x16xf32>
    %76 = arith.mulf %75, %14 : vector<2x16x16xf32>
    %77 = arith.addf %73, %76 : vector<2x16x16xf32>
    %c1_30 = arith.constant 1 : index
    %c7_31 = arith.constant 7 : index
    %78 = memref.load %arg4[%c1_30, %c7_31] : memref<4x8xf32, #tpu.memory_space<smem>>
    %79 = vector.broadcast %78 : f32 to vector<2x16x16xf32>
    %80 = arith.mulf %79, %16 : vector<2x16x16xf32>
    %81 = arith.addf %77, %80 : vector<2x16x16xf32>
    %c0_32 = arith.constant 0 : index
    %c1_33 = arith.constant 1 : index
    %c0_34 = arith.constant 0 : index
    %c0_35 = arith.constant 0 : index
    %82 = vector.load %arg6[%c0_32, %c1_33, %c0_34, %c0_35] : memref<2x4x16x16xf32, #tpu.memory_space<vmem>>, vector<2x1x16x16xf32>
    %83 = vector.shape_cast %82 : vector<2x1x16x16xf32> to vector<2x16x16xf32>
    %84 = vector.shape_cast %81 : vector<2x16x16xf32> to vector<2x1x16x16xf32>
    tpu.vector_store %arg6[%c0_32, %c1_33, %c0_34, %c0_35], %84 {strides = array<i32>} : memref<2x4x16x16xf32, #tpu.memory_space<vmem>>, vector<2x1x16x16xf32>,
    %c2_36 = arith.constant 2 : index
    %c0_37 = arith.constant 0 : index
    %85 = memref.load %arg4[%c2_36, %c0_37] : memref<4x8xf32, #tpu.memory_space<smem>>
    %86 = vector.broadcast %85 : f32 to vector<2x16x16xf32>
    %87 = arith.mulf %86, %2 : vector<2x16x16xf32>
    %c2_38 = arith.constant 2 : index
    %c1_39 = arith.constant 1 : index
    %88 = memref.load %arg4[%c2_38, %c1_39] : memref<4x8xf32, #tpu.memory_space<smem>>
    %89 = vector.broadcast %88 : f32 to vector<2x16x16xf32>
    %90 = arith.mulf %89, %4 : vector<2x16x16xf32>
    %91 = arith.addf %87, %90 : vector<2x16x16xf32>
    %c2_40 = arith.constant 2 : index
    %c2_41 = arith.constant 2 : index
    %92 = memref.load %arg4[%c2_40, %c2_41] : memref<4x8xf32, #tpu.memory_space<smem>>
    %93 = vector.broadcast %92 : f32 to vector<2x16x16xf32>
    %94 = arith.mulf %93, %6 : vector<2x16x16xf32>
    %95 = arith.addf %91, %94 : vector<2x16x16xf32>
    %c2_42 = arith.constant 2 : index
    %c3_43 = arith.constant 3 : index
    %96 = memref.load %arg4[%c2_42, %c3_43] : memref<4x8xf32, #tpu.memory_space<smem>>
    %97 = vector.broadcast %96 : f32 to vector<2x16x16xf32>
    %98 = arith.mulf %97, %8 : vector<2x16x16xf32>
    %99 = arith.addf %95, %98 : vector<2x16x16xf32>
    %c2_44 = arith.constant 2 : index
    %c4_45 = arith.constant 4 : index
    %100 = memref.load %arg4[%c2_44, %c4_45] : memref<4x8xf32, #tpu.memory_space<smem>>
    %101 = vector.broadcast %100 : f32 to vector<2x16x16xf32>
    %102 = arith.mulf %101, %10 : vector<2x16x16xf32>
    %103 = arith.addf %99, %102 : vector<2x16x16xf32>
    %c2_46 = arith.constant 2 : index
    %c5_47 = arith.constant 5 : index
    %104 = memref.load %arg4[%c2_46, %c5_47] : memref<4x8xf32, #tpu.memory_space<smem>>
    %105 = vector.broadcast %104 : f32 to vector<2x16x16xf32>
    %106 = arith.mulf %105, %12 : vector<2x16x16xf32>
    %107 = arith.addf %103, %106 : vector<2x16x16xf32>
    %c2_48 = arith.constant 2 : index
    %c6_49 = arith.constant 6 : index
    %108 = memref.load %arg4[%c2_48, %c6_49] : memref<4x8xf32, #tpu.memory_space<smem>>
    %109 = vector.broadcast %108 : f32 to vector<2x16x16xf32>
    %110 = arith.mulf %109, %14 : vector<2x16x16xf32>
    %111 = arith.addf %107, %110 : vector<2x16x16xf32>
    %c2_50 = arith.constant 2 : index
    %c7_51 = arith.constant 7 : index
    %112 = memref.load %arg4[%c2_50, %c7_51] : memref<4x8xf32, #tpu.memory_space<smem>>
    %113 = vector.broadcast %112 : f32 to vector<2x16x16xf32>
    %114 = arith.mulf %113, %16 : vector<2x16x16xf32>
    %115 = arith.addf %111, %114 : vector<2x16x16xf32>
    %c0_52 = arith.constant 0 : index
    %c2_53 = arith.constant 2 : index
    %c0_54 = arith.constant 0 : index
    %c0_55 = arith.constant 0 : index
    %116 = vector.load %arg6[%c0_52, %c2_53, %c0_54, %c0_55] : memref<2x4x16x16xf32, #tpu.memory_space<vmem>>, vector<2x1x16x16xf32>
    %117 = vector.shape_cast %116 : vector<2x1x16x16xf32> to vector<2x16x16xf32>
    %118 = vector.shape_cast %115 : vector<2x16x16xf32> to vector<2x1x16x16xf32>
    tpu.vector_store %arg6[%c0_52, %c2_53, %c0_54, %c0_55], %118 {strides = array<i32>} : memref<2x4x16x16xf32, #tpu.memory_space<vmem>>, vector<2x1x16x16xf32>,
    %c3_56 = arith.constant 3 : index
    %c0_57 = arith.constant 0 : index
    %119 = memref.load %arg4[%c3_56, %c0_57] : memref<4x8xf32, #tpu.memory_space<smem>>
    %120 = vector.broadcast %119 : f32 to vector<2x16x16xf32>
    %121 = arith.mulf %120, %2 : vector<2x16x16xf32>
    %c3_58 = arith.constant 3 : index
    %c1_59 = arith.constant 1 : index
    %122 = memref.load %arg4[%c3_58, %c1_59] : memref<4x8xf32, #tpu.memory_space<smem>>
    %123 = vector.broadcast %122 : f32 to vector<2x16x16xf32>
    %124 = arith.mulf %123, %4 : vector<2x16x16xf32>
    %125 = arith.addf %121, %124 : vector<2x16x16xf32>
    %c3_60 = arith.constant 3 : index
    %c2_61 = arith.constant 2 : index
    %126 = memref.load %arg4[%c3_60, %c2_61] : memref<4x8xf32, #tpu.memory_space<smem>>
    %127 = vector.broadcast %126 : f32 to vector<2x16x16xf32>
    %128 = arith.mulf %127, %6 : vector<2x16x16xf32>
    %129 = arith.addf %125, %128 : vector<2x16x16xf32>
    %c3_62 = arith.constant 3 : index
    %c3_63 = arith.constant 3 : index
    %130 = memref.load %arg4[%c3_62, %c3_63] : memref<4x8xf32, #tpu.memory_space<smem>>
    %131 = vector.broadcast %130 : f32 to vector<2x16x16xf32>
    %132 = arith.mulf %131, %8 : vector<2x16x16xf32>
    %133 = arith.addf %129, %132 : vector<2x16x16xf32>
    %c3_64 = arith.constant 3 : index
    %c4_65 = arith.constant 4 : index
    %134 = memref.load %arg4[%c3_64, %c4_65] : memref<4x8xf32, #tpu.memory_space<smem>>
    %135 = vector.broadcast %134 : f32 to vector<2x16x16xf32>
    %136 = arith.mulf %135, %10 : vector<2x16x16xf32>
    %137 = arith.addf %133, %136 : vector<2x16x16xf32>
    %c3_66 = arith.constant 3 : index
    %c5_67 = arith.constant 5 : index
    %138 = memref.load %arg4[%c3_66, %c5_67] : memref<4x8xf32, #tpu.memory_space<smem>>
    %139 = vector.broadcast %138 : f32 to vector<2x16x16xf32>
    %140 = arith.mulf %139, %12 : vector<2x16x16xf32>
    %141 = arith.addf %137, %140 : vector<2x16x16xf32>
    %c3_68 = arith.constant 3 : index
    %c6_69 = arith.constant 6 : index
    %142 = memref.load %arg4[%c3_68, %c6_69] : memref<4x8xf32, #tpu.memory_space<smem>>
    %143 = vector.broadcast %142 : f32 to vector<2x16x16xf32>
    %144 = arith.mulf %143, %14 : vector<2x16x16xf32>
    %145 = arith.addf %141, %144 : vector<2x16x16xf32>
    %c3_70 = arith.constant 3 : index
    %c7_71 = arith.constant 7 : index
    %146 = memref.load %arg4[%c3_70, %c7_71] : memref<4x8xf32, #tpu.memory_space<smem>>
    %147 = vector.broadcast %146 : f32 to vector<2x16x16xf32>
    %148 = arith.mulf %147, %16 : vector<2x16x16xf32>
    %149 = arith.addf %145, %148 : vector<2x16x16xf32>
    %c0_72 = arith.constant 0 : index
    %c3_73 = arith.constant 3 : index
    %c0_74 = arith.constant 0 : index
    %c0_75 = arith.constant 0 : index
    %150 = vector.load %arg6[%c0_72, %c3_73, %c0_74, %c0_75] : memref<2x4x16x16xf32, #tpu.memory_space<vmem>>, vector<2x1x16x16xf32>
    %151 = vector.shape_cast %150 : vector<2x1x16x16xf32> to vector<2x16x16xf32>
    %152 = vector.shape_cast %149 : vector<2x16x16xf32> to vector<2x1x16x16xf32>
    tpu.vector_store %arg6[%c0_72, %c3_73, %c0_74, %c0_75], %152 {strides = array<i32>} : memref<2x4x16x16xf32, #tpu.memory_space<vmem>>, vector<2x1x16x16xf32>,
    %c0_76 = arith.constant 0 : index
    %c0_77 = arith.constant 0 : index
    %c0_78 = arith.constant 0 : index
    %c0_79 = arith.constant 0 : index
    %153 = vector.load %arg6[%c0_76, %c0_77, %c0_78, %c0_79] : memref<2x4x16x16xf32, #tpu.memory_space<vmem>>, vector<2x4x16x16xf32>
    %154 = vector.shape_cast %153 : vector<2x4x16x16xf32> to vector<128x16xf32>
    %c0_80 = arith.constant 0 : index
    %c0_81 = arith.constant 0 : index
    %155 = vector.load %arg2[%c0_80, %c0_81] : memref<16x32xf32, #tpu.memory_space<vmem>>, vector<16x32xf32>
    %cst = arith.constant dense<0.000000e+00> : vector<128x32xf32>
    %156 = tpu.matmul %154, %155, %cst {dimension_numbers = #tpu.dot_dimension_numbers<[1], [0], [0], [1], [0, 0, 1, 1], [], []>} : vector<128x16xf32>, vector<16x32xf32>, vector<128x32xf32> -> vector<128x32xf32>
    %157 = vector.shape_cast %156 : vector<128x32xf32> to vector<8x16x32xf32>
    %c0_82 = arith.constant 0 : index
    %c0_83 = arith.constant 0 : index
    %158 = vector.load %arg3[%c0_82, %c0_83] : memref<32x16xf32, #tpu.memory_space<vmem>>, vector<32x16xf32>
    %159 = vector.extract_strided_slice %157 {offsets = [0, 0, 0], sizes = [1, 16, 32], strides = [1, 1, 1]} : vector<8x16x32xf32> to vector<1x16x32xf32>
    %160 = vector.shape_cast %159 : vector<1x16x32xf32> to vector<16x32xf32>
    %cst_84 = arith.constant dense<0.000000e+00> : vector<32x32xf32>
    %161 = tpu.matmul %158, %160, %cst_84 {dimension_numbers = #tpu.dot_dimension_numbers<[1], [0], [0], [1], [0, 0, 1, 1], [], []>} : vector<32x16xf32>, vector<16x32xf32>, vector<32x32xf32> -> vector<32x32xf32>
    %c0_85 = arith.constant 0 : index
    %c0_86 = arith.constant 0 : index
    %c0_87 = arith.constant 0 : index
    %c0_88 = arith.constant 0 : index
    %162 = vector.load %arg5[%c0_85, %c0_86, %c0_87, %c0_88] : memref<2x4x32x32xf32, #tpu.memory_space<vmem>>, vector<1x1x32x32xf32>
    %163 = vector.shape_cast %162 : vector<1x1x32x32xf32> to vector<32x32xf32>
    %164 = vector.shape_cast %161 : vector<32x32xf32> to vector<1x1x32x32xf32>
    tpu.vector_store %arg5[%c0_85, %c0_86, %c0_87, %c0_88], %164 {strides = array<i32>} : memref<2x4x32x32xf32, #tpu.memory_space<vmem>>, vector<1x1x32x32xf32>,
    %165 = vector.extract_strided_slice %157 {offsets = [1, 0, 0], sizes = [1, 16, 32], strides = [1, 1, 1]} : vector<8x16x32xf32> to vector<1x16x32xf32>
    %166 = vector.shape_cast %165 : vector<1x16x32xf32> to vector<16x32xf32>
    %cst_89 = arith.constant dense<0.000000e+00> : vector<32x32xf32>
    %167 = tpu.matmul %158, %166, %cst_89 {dimension_numbers = #tpu.dot_dimension_numbers<[1], [0], [0], [1], [0, 0, 1, 1], [], []>} : vector<32x16xf32>, vector<16x32xf32>, vector<32x32xf32> -> vector<32x32xf32>
    %c0_90 = arith.constant 0 : index
    %c1_91 = arith.constant 1 : index
    %c0_92 = arith.constant 0 : index
    %c0_93 = arith.constant 0 : index
    %168 = vector.load %arg5[%c0_90, %c1_91, %c0_92, %c0_93] : memref<2x4x32x32xf32, #tpu.memory_space<vmem>>, vector<1x1x32x32xf32>
    %169 = vector.shape_cast %168 : vector<1x1x32x32xf32> to vector<32x32xf32>
    %170 = vector.shape_cast %167 : vector<32x32xf32> to vector<1x1x32x32xf32>
    tpu.vector_store %arg5[%c0_90, %c1_91, %c0_92, %c0_93], %170 {strides = array<i32>} : memref<2x4x32x32xf32, #tpu.memory_space<vmem>>, vector<1x1x32x32xf32>,
    %171 = vector.extract_strided_slice %157 {offsets = [2, 0, 0], sizes = [1, 16, 32], strides = [1, 1, 1]} : vector<8x16x32xf32> to vector<1x16x32xf32>
    %172 = vector.shape_cast %171 : vector<1x16x32xf32> to vector<16x32xf32>
    %cst_94 = arith.constant dense<0.000000e+00> : vector<32x32xf32>
    %173 = tpu.matmul %158, %172, %cst_94 {dimension_numbers = #tpu.dot_dimension_numbers<[1], [0], [0], [1], [0, 0, 1, 1], [], []>} : vector<32x16xf32>, vector<16x32xf32>, vector<32x32xf32> -> vector<32x32xf32>
    %c0_95 = arith.constant 0 : index
    %c2_96 = arith.constant 2 : index
    %c0_97 = arith.constant 0 : index
    %c0_98 = arith.constant 0 : index
    %174 = vector.load %arg5[%c0_95, %c2_96, %c0_97, %c0_98] : memref<2x4x32x32xf32, #tpu.memory_space<vmem>>, vector<1x1x32x32xf32>
    %175 = vector.shape_cast %174 : vector<1x1x32x32xf32> to vector<32x32xf32>
    %176 = vector.shape_cast %173 : vector<32x32xf32> to vector<1x1x32x32xf32>
    tpu.vector_store %arg5[%c0_95, %c2_96, %c0_97, %c0_98], %176 {strides = array<i32>} : memref<2x4x32x32xf32, #tpu.memory_space<vmem>>, vector<1x1x32x32xf32>,
    %177 = vector.extract_strided_slice %157 {offsets = [3, 0, 0], sizes = [1, 16, 32], strides = [1, 1, 1]} : vector<8x16x32xf32> to vector<1x16x32xf32>
    %178 = vector.shape_cast %177 : vector<1x16x32xf32> to vector<16x32xf32>
    %cst_99 = arith.constant dense<0.000000e+00> : vector<32x32xf32>
    %179 = tpu.matmul %158, %178, %cst_99 {dimension_numbers = #tpu.dot_dimension_numbers<[1], [0], [0], [1], [0, 0, 1, 1], [], []>} : vector<32x16xf32>, vector<16x32xf32>, vector<32x32xf32> -> vector<32x32xf32>
    %c0_100 = arith.constant 0 : index
    %c3_101 = arith.constant 3 : index
    %c0_102 = arith.constant 0 : index
    %c0_103 = arith.constant 0 : index
    %180 = vector.load %arg5[%c0_100, %c3_101, %c0_102, %c0_103] : memref<2x4x32x32xf32, #tpu.memory_space<vmem>>, vector<1x1x32x32xf32>
    %181 = vector.shape_cast %180 : vector<1x1x32x32xf32> to vector<32x32xf32>
    %182 = vector.shape_cast %179 : vector<32x32xf32> to vector<1x1x32x32xf32>
    tpu.vector_store %arg5[%c0_100, %c3_101, %c0_102, %c0_103], %182 {strides = array<i32>} : memref<2x4x32x32xf32, #tpu.memory_space<vmem>>, vector<1x1x32x32xf32>,
    %183 = vector.extract_strided_slice %157 {offsets = [4, 0, 0], sizes = [1, 16, 32], strides = [1, 1, 1]} : vector<8x16x32xf32> to vector<1x16x32xf32>
    %184 = vector.shape_cast %183 : vector<1x16x32xf32> to vector<16x32xf32>
    %cst_104 = arith.constant dense<0.000000e+00> : vector<32x32xf32>
    %185 = tpu.matmul %158, %184, %cst_104 {dimension_numbers = #tpu.dot_dimension_numbers<[1], [0], [0], [1], [0, 0, 1, 1], [], []>} : vector<32x16xf32>, vector<16x32xf32>, vector<32x32xf32> -> vector<32x32xf32>
    %c1_105 = arith.constant 1 : index
    %c0_106 = arith.constant 0 : index
    %c0_107 = arith.constant 0 : index
    %c0_108 = arith.constant 0 : index
    %186 = vector.load %arg5[%c1_105, %c0_106, %c0_107, %c0_108] : memref<2x4x32x32xf32, #tpu.memory_space<vmem>>, vector<1x1x32x32xf32>
    %187 = vector.shape_cast %186 : vector<1x1x32x32xf32> to vector<32x32xf32>
    %188 = vector.shape_cast %185 : vector<32x32xf32> to vector<1x1x32x32xf32>
    tpu.vector_store %arg5[%c1_105, %c0_106, %c0_107, %c0_108], %188 {strides = array<i32>} : memref<2x4x32x32xf32, #tpu.memory_space<vmem>>, vector<1x1x32x32xf32>,
    %189 = vector.extract_strided_slice %157 {offsets = [5, 0, 0], sizes = [1, 16, 32], strides = [1, 1, 1]} : vector<8x16x32xf32> to vector<1x16x32xf32>
    %190 = vector.shape_cast %189 : vector<1x16x32xf32> to vector<16x32xf32>
    %cst_109 = arith.constant dense<0.000000e+00> : vector<32x32xf32>
    %191 = tpu.matmul %158, %190, %cst_109 {dimension_numbers = #tpu.dot_dimension_numbers<[1], [0], [0], [1], [0, 0, 1, 1], [], []>} : vector<32x16xf32>, vector<16x32xf32>, vector<32x32xf32> -> vector<32x32xf32>
    %c1_110 = arith.constant 1 : index
    %c1_111 = arith.constant 1 : index
    %c0_112 = arith.constant 0 : index
    %c0_113 = arith.constant 0 : index
    %192 = vector.load %arg5[%c1_110, %c1_111, %c0_112, %c0_113] : memref<2x4x32x32xf32, #tpu.memory_space<vmem>>, vector<1x1x32x32xf32>
    %193 = vector.shape_cast %192 : vector<1x1x32x32xf32> to vector<32x32xf32>
    %194 = vector.shape_cast %191 : vector<32x32xf32> to vector<1x1x32x32xf32>
    tpu.vector_store %arg5[%c1_110, %c1_111, %c0_112, %c0_113], %194 {strides = array<i32>} : memref<2x4x32x32xf32, #tpu.memory_space<vmem>>, vector<1x1x32x32xf32>,
    %195 = vector.extract_strided_slice %157 {offsets = [6, 0, 0], sizes = [1, 16, 32], strides = [1, 1, 1]} : vector<8x16x32xf32> to vector<1x16x32xf32>
    %196 = vector.shape_cast %195 : vector<1x16x32xf32> to vector<16x32xf32>
    %cst_114 = arith.constant dense<0.000000e+00> : vector<32x32xf32>
    %197 = tpu.matmul %158, %196, %cst_114 {dimension_numbers = #tpu.dot_dimension_numbers<[1], [0], [0], [1], [0, 0, 1, 1], [], []>} : vector<32x16xf32>, vector<16x32xf32>, vector<32x32xf32> -> vector<32x32xf32>
    %c1_115 = arith.constant 1 : index
    %c2_116 = arith.constant 2 : index
    %c0_117 = arith.constant 0 : index
    %c0_118 = arith.constant 0 : index
    %198 = vector.load %arg5[%c1_115, %c2_116, %c0_117, %c0_118] : memref<2x4x32x32xf32, #tpu.memory_space<vmem>>, vector<1x1x32x32xf32>
    %199 = vector.shape_cast %198 : vector<1x1x32x32xf32> to vector<32x32xf32>
    %200 = vector.shape_cast %197 : vector<32x32xf32> to vector<1x1x32x32xf32>
    tpu.vector_store %arg5[%c1_115, %c2_116, %c0_117, %c0_118], %200 {strides = array<i32>} : memref<2x4x32x32xf32, #tpu.memory_space<vmem>>, vector<1x1x32x32xf32>,
    %201 = vector.extract_strided_slice %157 {offsets = [7, 0, 0], sizes = [1, 16, 32], strides = [1, 1, 1]} : vector<8x16x32xf32> to vector<1x16x32xf32>
    %202 = vector.shape_cast %201 : vector<1x16x32xf32> to vector<16x32xf32>
    %cst_119 = arith.constant dense<0.000000e+00> : vector<32x32xf32>
    %203 = tpu.matmul %158, %202, %cst_119 {dimension_numbers = #tpu.dot_dimension_numbers<[1], [0], [0], [1], [0, 0, 1, 1], [], []>} : vector<32x16xf32>, vector<16x32xf32>, vector<32x32xf32> -> vector<32x32xf32>
    %c1_120 = arith.constant 1 : index
    %c3_121 = arith.constant 3 : index
    %c0_122 = arith.constant 0 : index
    %c0_123 = arith.constant 0 : index
    %204 = vector.load %arg5[%c1_120, %c3_121, %c0_122, %c0_123] : memref<2x4x32x32xf32, #tpu.memory_space<vmem>>, vector<1x1x32x32xf32>
    %205 = vector.shape_cast %204 : vector<1x1x32x32xf32> to vector<32x32xf32>
    %206 = vector.shape_cast %203 : vector<32x32xf32> to vector<1x1x32x32xf32>
    tpu.vector_store %arg5[%c1_120, %c3_121, %c0_122, %c0_123], %206 {strides = array<i32>} : memref<2x4x32x32xf32, #tpu.memory_space<vmem>>, vector<1x1x32x32xf32>,
    return
  }
  func.func @transform_0(%arg0: i32) -> (i32, i32, i32, i32) {
    %c0_i32 = arith.constant 0 : i32
    %c0_i32_0 = arith.constant 0 : i32
    %c0_i32_1 = arith.constant 0 : i32
    %c0_i32_2 = arith.constant 0 : i32
    return %arg0, %c0_i32, %c0_i32_0, %c0_i32_1 : i32, i32, i32, i32
  }
  func.func @transform_1(%arg0: i32) -> (i32, i32) {
    %c0_i32 = arith.constant 0 : i32
    %c0_i32_0 = arith.constant 0 : i32
    %c0_i32_1 = arith.constant 0 : i32
    return %c0_i32, %c0_i32_0 : i32, i32
  }
  func.func @transform_2(%arg0: i32) -> (i32, i32) {
    %c0_i32 = arith.constant 0 : i32
    %c0_i32_0 = arith.constant 0 : i32
    %c0_i32_1 = arith.constant 0 : i32
    return %c0_i32, %c0_i32_0 : i32, i32
  }
  func.func @transform_3(%arg0: i32) -> (i32, i32) {
    %c0_i32 = arith.constant 0 : i32
    %c0_i32_0 = arith.constant 0 : i32
    %c0_i32_1 = arith.constant 0 : i32
    return %c0_i32, %c0_i32_0 : i32, i32
  }
  func.func @transform_4(%arg0: i32) -> (i32, i32, i32, i32) {
    %c0_i32 = arith.constant 0 : i32
    %c0_i32_0 = arith.constant 0 : i32
    %c0_i32_1 = arith.constant 0 : i32
    %c0_i32_2 = arith.constant 0 : i32
    return %arg0, %c0_i32, %c0_i32_0, %c0_i32_1 : i32, i32, i32, i32
  }
}

</mosaic_0001>

<bundles_post_ra>
// kernel: upsample_forward.1
= control target key start
LH: loop header
LB: loop body
LE: loop exit
PB: predicated region body
PF: predicated region fallthrough
CT: control target
= control target key end

     0   :  { %9 = vsyncpa [#allocation4], 0  ;;  %s2417_s0 = inlined_call_operand.hbm [shape: f32[2,8,16,16], index: 0, kind: input, shape index: {}]   ;;  %s2418_s1 = inlined_call_operand.hbm [shape: f32[16,32], index: 1, kind: input, shape index: {}]   ;;  %s2419_s2 = inlined_call_operand.hbm [shape: f32[32,16], index: 2, kind: input, shape index: {}]   ;;  %s2420_s3 = inlined_call_operand.hbm [shape: f32[4,8], index: 3, kind: input, shape index: {}]   ;;  %s2421_s4 = inlined_call_operand.hbm [shape: f32[2,4,32,32], index: 4, kind: output, shape index: {}]  }
   0x1   :  { %10 = vsyncpa [#allocation8], 0 }
   0x2   :  { %11 = vsyncpa [#allocation6], 0 }
   0x3   :  { %12 = vsyncpa [#allocation5], 0  ;;  %s1748_s15 = smov [#allocation7]   ;;  %s1749_s17 = smov [#allocation3]  }
   0x4   :  { %s30_s16 = sshll.u32 %s1748_s15, 4  ;;  %s18_s18 = sshll.u32 %s1749_s17, 4  ;;  %s31_s16 = int_to_ptr.vmem [resolvable:$true] %s30_s16  ;;  %s19_s18 = int_to_ptr.vmem [resolvable:$true] %s18_s18 }
   0x5   :  { %s1660_s19 = scalar_lea.vmem %s31_s16, 256  ;;  %p1665_p1 = scmp.lt.s32.totalorder %s31_s16, %s31_s16 }
   0x6   :  { %p1661_p0 = scmp.ne.s32.totalorder %s31_s16, %s1660_s19  ;;  %p1666_p2 = scmp.lt.s32.totalorder %s1660_s19, %s1660_s19 }
   0x8   :  { %p1667_p3 = por %p1666_p2, %p1665_p1 }
   0xa   :  { %p1668_p4 = pnand %p1667_p3, %p1661_p0 }
   0xc   :  { %1671 = shalt.err (!%p1668_p4)
}
   0xd   :  { %s1750_s20 = smov 128   ;;  %s1751_s21 = smov 8  }
   0xe   :  { %36 = dma.hbm_to_vmem [thread:$0]  %s2418_s1, 256, %s31_s16, [#allocation8], %s1750_s20, %s1750_s20, %s1751_s21  }
   0xf   :  { %s1680_s24 = scalar_lea.vmem %s19_s18, 4096  ;;  %p1685_p6 = scmp.lt.s32.totalorder %s19_s18, %s19_s18 }
  0x10   :  { %p1681_p5 = scmp.ne.s32.totalorder %s19_s18, %s1680_s24  ;;  %p1686_p7 = scmp.lt.s32.totalorder %s1680_s24, %s1680_s24 }
  0x12   :  { %p1687_p8 = por %p1686_p7, %p1685_p6 }
  0x14   :  { %p1688_p9 = pnand %p1687_p8, %p1681_p5 }
  0x16   :  { %1691 = shalt.err (!%p1688_p9)
}
  0x17   :  { %24 = dma.hbm_to_vmem [thread:$0]  %s2417_s0, 4096, %s19_s18, [#allocation4], %s1750_s20, %s1750_s20, %s1751_s21  }
  0x18   :  { %s1752_s27 = smov [#allocation9]  }
  0x19   :  { %s42_s28 = sshll.u32 %s1752_s27, 4  ;;  %s43_s28 = int_to_ptr.vmem [resolvable:$true] %s42_s28 }
  0x1a   :  { %s1700_s29 = scalar_lea.vmem %s43_s28, 512  ;;  %p1705_p11 = scmp.lt.s32.totalorder %s43_s28, %s43_s28 }
  0x1b   :  { %p1701_p10 = scmp.ne.s32.totalorder %s43_s28, %s1700_s29  ;;  %p1706_p12 = scmp.lt.s32.totalorder %s1700_s29, %s1700_s29 }
  0x1d   :  { %p1707_p13 = por %p1706_p12, %p1705_p11 }
  0x1f   :  { %p1708_p0 = pnand %p1707_p13, %p1701_p10 }
  0x21   :  { %1711 = shalt.err (!%p1708_p0)
}
  0x22   :  { %48 = dma.hbm_to_vmem [thread:$0]  %s2419_s2, 512, %s43_s28, [#allocation8], %s1750_s20, %s1750_s20, %s1751_s21  }
  0x23   :  { %s1753_s5 = smov [#allocation10]  }
  0x24   :  { %56 = dma.hbm_to_smem %s2420_s3, 64, %s1753_s5, [#allocation6]  }
  0x25   :  { %1740 = dma.done.wait [#allocation4], 4096  }
  0x26   :  { %1741 = vsyncadd [#allocation4], 4294963200 }
  0x27   :  { %1742 = dma.done.wait [#allocation8], 768  }
  0x28   :  { %1743 = vsyncadd [#allocation8], 4294966528 }
  0x29   :  { %1744 = dma.done.wait [#allocation6], 64  }
  0x2a   :  { %1745 = vsyncadd [#allocation6], 4294967232 }
  0x2b   :  { %69 = sfence }
  0x2c   :  { %v443_v0 = vld [vmem:[#allocation7 + $0x8] sm:$0xff]  ;;  %v442_v1 = vld [vmem:[#allocation7] sm:$0xff]  ;;  %s102_s7 = sld [smem:[#allocation10]]  ;;  %v1805_v4 = vld [vmem:[#allocation3 + $0x10] sm:$0xff]  ;;  %vm178_vm0 = vcmask 130048   ;;  %vm738_vm1 = vcmask 261120  }
  0x2d   :  { %1537 = vmatprep.subr.mxu0 %v443_v0  ;;  %s1392_s8 = sld [smem:[#allocation10 + $0x1]]  ;;  %v1801_v2 = vld [vmem:[#allocation3] sm:$0xff]  ;;  %v1803_v3 = vld [vmem:[#allocation3 + $0x8] sm:$0xff]  ;;  %v1809_v5 = vld [vmem:[#allocation3 + $0x18] sm:$0xff] }
  0x2e   :  { %1538 = vmatpush3.msra.mxu0 %v443_v0  ;;  %s1393_s9 = sld [smem:[#allocation10 + $0x2]]  ;;  %v1811_v6 = vld [vmem:[#allocation3 + $0x20] sm:$0xff]  ;;  %v1817_v8 = vld [vmem:[#allocation3 + $0x28] sm:$0xff]  ;;  %v1819_v9 = vld [vmem:[#allocation3 + $0x30] sm:$0xff] }
  0x2f   :  { %1539 = vmatprep.subr.mxu0 %v442_v1  ;;  %s1394_s2 = sld [smem:[#allocation10 + $0x3]]  ;;  %v1829_v13 = vld [vmem:[#allocation3 + $0x40] sm:$0xff]  ;;  %v1835_v16 = vld [vmem:[#allocation3 + $0x38] sm:$0xff]  ;;  %v1845_v20 = vld [vmem:[#allocation3 + $0x48] sm:$0xff] }
  0x30   :  { %1540 = vmatpush3.msra.mxu0 %v442_v1  ;;  %s1395_s3 = sld [smem:[#allocation10 + $0x4]]  ;;  %v1851_v22 = vld [vmem:[#allocation3 + $0x50] sm:$0xff]  ;;  %v1853_v23 = vld [vmem:[#allocation3 + $0x60] sm:$0xff]  ;;  %v1868_v31 = vld [vmem:[#allocation3 + $0x58] sm:$0xff] }
  0x31   :  { %s1807_s10 = sld [smem:[#allocation10 + $0x5]]  ;;  %v1861_v28 = vld [vmem:[#allocation3 + $0x80] sm:$0xff]  ;;  %v1870_v32 = vld [vmem:[#allocation3 + $0x68] sm:$0xff]  ;;  %v1876_v34 = vld [vmem:[#allocation3 + $0x70] sm:$0xff] }
  0x32   :  { %v1813_v7 = vstv %s102_s7  ;;  %s1815_s11 = sld [smem:[#allocation10 + $0x6]]  ;;  %v1881_v37 = vld [vmem:[#allocation3 + $0x78] sm:$0xff]  ;;  %v1938_v0 = vld [vmem:[#allocation3 + $0x90] sm:$0xff] }
  0x33   :  { %v104_v10 = vmul.f32 %v1813_v7, %v1801_v2  ;;  %v1823_v11 = vstv %s1392_s8  ;;  %s1825_s12 = sld [smem:[#allocation10 + $0x7]]  ;;  %v105_v12 = vmul.f32 %v1813_v7, %v1803_v3  ;;  %v1898_v43 = vmul.f32 %v1813_v7, %v1861_v28 }
  0x34   :  { %v110_v14 = vmul.f32 %v1823_v11, %v1805_v4  ;;  %v1833_v15 = vstv %s1393_s9  ;;  %v111_v17 = vmul.f32 %v1823_v11, %v1809_v5  ;;  %s1839_s13 = sld [smem:[#allocation10 + $0x80]] }
  0x35   :  { %v120_v18 = vmul.f32 %v1833_v15, %v1811_v6  ;;  %v1843_v19 = vstv %s1394_s2  ;;  %v121_v21 = vmul.f32 %v1833_v15, %v1817_v8  ;;  %s1849_s14 = sld [smem:[#allocation10 + $0x81]] }
  0x36   :  { %v114_v24 = vadd.f32 %v110_v14, %v104_v10  ;;  %v130_v25 = vmul.f32 %v1843_v19, %v1819_v9  ;;  %v1857_v26 = vstv %s1395_s3  ;;  %v115_v27 = vadd.f32 %v111_v17, %v105_v12  ;;  %s1859_s15 = sld [smem:[#allocation10 + $0x82]]  ;;  %s1754_s3 = smov [#allocation11]  }
  0x37   :  { %v140_v29 = vmul.f32 %v1857_v26, %v1829_v13  ;;  %v1866_v30 = vstv %s1807_s10  ;;  %v131_v33 = vmul.f32 %v1843_v19, %v1835_v16  ;;  %s1874_s16 = sld [smem:[#allocation10 + $0x83]]  ;;  %v141_v39 = vmul.f32 %v1857_v26, %v1845_v20  ;;  %s1378_s10 = sshll.u32 %s1754_s3, 4  ;;  %s1379_s10 = int_to_ptr.vmem [resolvable:$true] %s1378_s10 }
  0x38   :  { %v124_v35 = vadd.f32 %v120_v18, %v114_v24  ;;  %v1879_v36 = vstv %s1815_s11  ;;  %v125_v38 = vadd.f32 %v121_v21, %v115_v27  ;;  %s1885_s17 = sld [smem:[#allocation10 + $0x84]]  ;;  %v150_v40 = vmul.f32 %v1866_v30, %v1851_v22  ;;  %s1720_s11 = scalar_lea.vmem %s1379_s10, 4096 }
  0x39   :  { %v160_v41 = vmul.f32 %v1879_v36, %v1853_v23  ;;  %v1892_v42 = vstv %s1825_s12  ;;  %s1894_s18 = sld [smem:[#allocation10 + $0x85]]  ;;  %v151_v46 = vmul.f32 %v1866_v30, %v1868_v31  ;;  %v161_v47 = vmul.f32 %v1879_v36, %v1870_v32  ;;  %p1721_p1 = scmp.ne.s32.totalorder %s1379_s10, %s1720_s11 }
  0x3a   :  { %v134_v44 = vadd.f32 %v130_v25, %v124_v35  ;;  %v135_v45 = vadd.f32 %v131_v33, %v125_v38  ;;  %s1904_s19 = sld [smem:[#allocation10 + $0x86]]  ;;  %v170_v48 = vmul.f32 %v1892_v42, %v1876_v34  ;;  %v171_v49 = vmul.f32 %v1892_v42, %v1881_v37  ;;  %v1954_v25 = vld [vmem:[#allocation3 + $0xa0] sm:$0xff]  ;;  %p1725_p2 = scmp.lt.s32.totalorder %s1379_s10, %s1379_s10 }
  0x3b   :  { %v1911_v50 = vstv %s1839_s13  ;;  %v1914_v51 = vstv %s1849_s14  ;;  %s1406_s22 = sld [smem:[#allocation10 + $0x87]]  ;;  %v112_v35 = vmul.f32 %v1823_v11, %v1938_v0  ;;  %p1726_p3 = scmp.lt.s32.totalorder %s1720_s11, %s1720_s11 }
  0x3c   :  { %v144_v52 = vadd.f32 %v140_v29, %v134_v44  ;;  %v145_v53 = vadd.f32 %v141_v39, %v135_v45  ;;  %v185_v54 = vmul.f32 %v1911_v50, %v1801_v2  ;;  %v191_v55 = vmul.f32 %v1914_v51, %v1805_v4  ;;  %s1920_s23 = sld [smem:[#allocation10 + $0x100]] }
  0x3d   :  { %v1923_v56 = vstv %s1859_s15  ;;  %v1926_v57 = vstv %s1874_s16  ;;  %v186_v58 = vmul.f32 %v1911_v50, %v1803_v3  ;;  %v192_v59 = vmul.f32 %v1914_v51, %v1809_v5  ;;  %s1932_s24 = sld [smem:[#allocation10 + $0x101]]  ;;  %p1727_p4 = por %p1726_p3, %p1725_p2 }
  0x3e   :  { %v154_v60 = vadd.f32 %v150_v40, %v144_v52  ;;  %v155_v61 = vadd.f32 %v151_v46, %v145_v53  ;;  %v195_v62 = vadd.f32 %v191_v55, %v185_v54  ;;  %v201_v63 = vmul.f32 %v1923_v56, %v1811_v6  ;;  %s1936_s25 = sld [smem:[#allocation10 + $0x102]] }
  0x3f   :  { %v211_v1 = vmul.f32 %v1926_v57, %v1819_v9  ;;  %v1943_v10 = vstv %s1885_s17  ;;  %v1946_v12 = vstv %s1894_s18  ;;  %v196_v14 = vadd.f32 %v192_v59, %v186_v58  ;;  %s1948_s26 = sld [smem:[#allocation10 + $0x103]]  ;;  %p1728_p5 = pnand %p1727_p4, %p1721_p1 }
  0x40   :  { %v164_v17 = vadd.f32 %v160_v41, %v154_v60  ;;  %v165_v18 = vadd.f32 %v161_v47, %v155_v61  ;;  %v205_v21 = vadd.f32 %v201_v63, %v195_v62  ;;  %v221_v24 = vmul.f32 %v1943_v10, %v1829_v13  ;;  %s1952_s27 = sld [smem:[#allocation10 + $0x104]] }
  0x41   :  { %v1957_v27 = vstv %s1904_s19  ;;  %v1959_v29 = vstv %s1406_s22  ;;  %v202_v33 = vmul.f32 %v1923_v56, %v1817_v8  ;;  %s1963_s28 = sld [smem:[#allocation10 + $0x105]]  ;;  %v231_v41 = vmul.f32 %v1946_v12, %v1851_v22 }
  0x42   :  { %2432 = vst [vmem:[#allocation16_spill] sm:$0xff] %v1959_v29  ;;  %v174_v38 = vadd.f32 %v170_v48, %v164_v17  ;;  %v175_v39 = vadd.f32 %v171_v49, %v165_v18  ;;  %v215_v40 = vadd.f32 %v211_v1, %v205_v21  ;;  %s1969_s29 = sld [smem:[#allocation10 + $0x106]]  ;;  %v212_v45 = vmul.f32 %v1926_v57, %v1835_v16  ;;  %v2020_v21 = vld [vmem:[#allocation3 + $0xb0] sm:$0xff] }
  0x43   :  { %v206_v44 = vadd.f32 %v202_v33, %v196_v14  ;;  %v222_v46 = vmul.f32 %v1943_v10, %v1845_v20  ;;  %s1975_s1 = sld [smem:[#allocation10 + $0x107]]  ;;  %v1979_v47 = vmul.f32 %v1833_v15, %v1954_v25  ;;  %v241_v49 = vmul.f32 %v1957_v27, %v1853_v23 }
  0x44   :  { %179 = vst.msk [vmem:[#allocation2] sm:$0xff] %vm178_vm0, %v174_v38  ;;  %180 = vst.msk [vmem:[#allocation2 + $0x8] sm:$0xff] %vm178_vm0, %v175_v39  ;;  %v225_v48 = vadd.f32 %v221_v24, %v215_v40  ;;  %v251_v52 = vmul.f32 %v1959_v29, %v1876_v34  ;;  %v232_v53 = vmul.f32 %v1946_v12, %v1868_v31  ;;  %s1989_s30 = sld [smem:[#allocation10 + $0x180]]  ;;  %v1992_v55 = vstv %s1920_s23 }
  0x45   :  { %v216_v54 = vadd.f32 %v212_v45, %v206_v44  ;;  %v1995_v58 = vstv %s1932_s24  ;;  %v1998_v59 = vstv %s1936_s25  ;;  %s2000_s5 = sld [smem:[#allocation10 + $0x181]]  ;;  %v266_v61 = vmul.f32 %v1992_v55, %v1801_v2 }
  0x46   :  { %2433 = vst [vmem:[#allocation17_spill] sm:$0xff] %v1995_v58  ;;  %2434 = vst [vmem:[#allocation18_spill] sm:$0xff] %v1998_v59  ;;  %v235_v60 = vadd.f32 %v231_v41, %v225_v48  ;;  %v272_v62 = vmul.f32 %v1995_v58, %v1805_v4  ;;  %v282_v63 = vmul.f32 %v1998_v59, %v1811_v6  ;;  %s2008_s6 = sld [smem:[#allocation10 + $0x182]]  ;;  %v2013_v17 = vstv %s1948_s26 }
  0x47   :  { %v226_v1 = vadd.f32 %v222_v46, %v216_v54  ;;  %v242_v14 = vmul.f32 %v1957_v27, %v1870_v32  ;;  %2435 = vst [vmem:[#allocation19_spill] sm:$0xff] %v2013_v17  ;;  %v2016_v18 = vstv %s1952_s27  ;;  %s2018_s0 = sld [smem:[#allocation10 + $0x183]]  ;;  %v292_v38 = vmul.f32 %v2013_v17, %v1819_v9 }
  0x48   :  { %2436 = vst [vmem:[#allocation20_spill] sm:$0xff] %v2016_v18  ;;  %v245_v24 = vadd.f32 %v241_v49, %v235_v60  ;;  %v276_v33 = vadd.f32 %v272_v62, %v266_v61  ;;  %s2024_s7 = sld [smem:[#allocation10 + $0x184]]  ;;  %v2027_v39 = vadd.f32 %v112_v35, %v1898_v43  ;;  %v252_v41 = vmul.f32 %v1959_v29, %v1881_v37 }
  0x49   :  { %v236_v40 = vadd.f32 %v232_v53, %v226_v1  ;;  %v2032_v44 = vstv %s1963_s28  ;;  %v2035_v45 = vstv %s1969_s29  ;;  %s2037_s8 = sld [smem:[#allocation10 + $0x185]]  ;;  %v302_v49 = vmul.f32 %v2016_v18, %v1829_v13 }
  0x4a   :  { %v255_v46 = vadd.f32 %v251_v52, %v245_v24  ;;  %v286_v48 = vadd.f32 %v282_v63, %v276_v33  ;;  %s2041_s9 = sld [smem:[#allocation10 + $0x186]]  ;;  %v2045_v43 = vmul.f32 %v1843_v19, %v2020_v21  ;;  %v267_v60 = vmul.f32 %v1992_v55, %v1803_v3 }
  0x4b   :  { %v426_v35 = vld [vmem:[#allocation2] sm:$0xff]  ;;  %v427_v53 = vld [vmem:[#allocation2 + $0x8] sm:$0xff]  ;;  %v246_v54 = vadd.f32 %v242_v14, %v236_v40  ;;  %v273_v52 = vmul.f32 %v1995_v58, %v1809_v5  ;;  %v283_v61 = vmul.f32 %v1998_v59, %v1817_v8  ;;  %s2053_s2 = sld [smem:[#allocation10 + $0x187]]  ;;  %v312_v63 = vmul.f32 %v2032_v44, %v1851_v22 }
  0x4c   :  { %1541 = vmatprep.mubr.msk.f32.mxu0 %vm178_vm0, %v426_v35  ;;  %260 = vst.msk [vmem:[#allocation2 + $0x10] sm:$0xff] %vm178_vm0, %v255_v46  ;;  %v296_v62 = vadd.f32 %v292_v38, %v286_v48  ;;  %v322_v1 = vmul.f32 %v2035_v45, %v1853_v23  ;;  %v2062_v14 = vstv %s1975_s1  ;;  %v293_v40 = vmul.f32 %v2013_v17, %v1835_v16 }
  0x4d   :  { %1542 = vmatmul.mubr.msk.f32.vlgmr.msra.gmra.mxu0 %vm178_vm0, %v427_v53  ;;  %v256_v24 = vadd.f32 %v252_v41, %v246_v54  ;;  %v277_v33 = vadd.f32 %v273_v52, %v267_v60  ;;  %v303_v38 = vmul.f32 %v2016_v18, %v1845_v20  ;;  %v2070_v48 = vstv %s1989_s30 }
  0x4e   :  { %v306_v46 = vadd.f32 %v302_v49, %v296_v62  ;;  %v2073_v35 = vstv %s2000_s5  ;;  %v2076_v29 = vstv %s2008_s6  ;;  %v347_v41 = vmul.f32 %v2070_v48, %v1801_v2 }
  0x4f   :  { %261 = vst.msk [vmem:[#allocation2 + $0x18] sm:$0xff] %vm178_vm0, %v256_v24  ;;  %v287_v53 = vadd.f32 %v283_v61, %v277_v33  ;;  %v353_v54 = vmul.f32 %v2073_v35, %v1805_v4  ;;  %v363_v60 = vmul.f32 %v2076_v29, %v1811_v6  ;;  %v332_v52 = vmul.f32 %v2062_v14, %v1876_v34 }
  0x50   :  { %v316_v49 = vadd.f32 %v312_v63, %v306_v46  ;;  %v2088_v62 = vstv %s2018_s0  ;;  %v2091_v24 = vstv %s2024_s7  ;;  %v313_v2 = vmul.f32 %v2032_v44, %v1868_v31 }
  0x51   :  { %v297_v61 = vadd.f32 %v293_v40, %v287_v53  ;;  %v357_v33 = vadd.f32 %v353_v54, %v347_v41  ;;  %v373_v4 = vmul.f32 %v2088_v62, %v1819_v9  ;;  %v323_v6 = vmul.f32 %v2035_v45, %v1870_v32  ;;  %v2117_v54 = vld [vmem:[#allocation3 + $0xc0] sm:$0xff] }
  0x52   :  { %v326_v18 = vadd.f32 %v322_v1, %v316_v49  ;;  %v383_v63 = vmul.f32 %v2091_v24, %v1829_v13  ;;  %v2102_v46 = vstv %s2037_s8  ;;  %v2105_v40 = vstv %s2041_s9 }
  0x53   :  { %v428_v17 = vld [vmem:[#allocation2 + $0x10] sm:$0xff]  ;;  %v307_v59 = vadd.f32 %v303_v38, %v297_v61  ;;  %v367_v58 = vadd.f32 %v363_v60, %v357_v33  ;;  %v2108_v53 = vstv %s2053_s2  ;;  %v348_v9 = vmul.f32 %v2070_v48, %v1803_v3  ;;  %v2132_v61 = vld [vmem:[#allocation3 + $0x88] sm:$0xff] }
  0x54   :  { %1544 = vmatprep.mubr.msk.f32.mxu0 %vm178_vm0, %v428_v17  ;;  %v336_v41 = vadd.f32 %v332_v52, %v326_v18  ;;  %v354_v1 = vmul.f32 %v2073_v35, %v1809_v5  ;;  %v364_v13 = vmul.f32 %v2076_v29, %v1817_v8  ;;  %v333_v60 = vmul.f32 %v2062_v14, %v1881_v37  ;;  %v2123_v18 = vld [vmem:[#allocation3 + $0xd0] sm:$0xff] }
  0x55   :  { %v317_v38 = vadd.f32 %v313_v2, %v307_v59  ;;  %v377_v49 = vadd.f32 %v373_v4, %v367_v58  ;;  %v393_v17 = vmul.f32 %v2102_v46, %v1851_v22  ;;  %v403_v3 = vmul.f32 %v2105_v40, %v1853_v23  ;;  %v2139_v23 = vld [vmem:[#allocation3 + $0x98] sm:$0xff]  ;;  %v2141_v4 = vld [vmem:[#allocation3 + $0xa8] sm:$0xff] }
  0x56   :  { %v429_v52 = vld [vmem:[#allocation2 + $0x18] sm:$0xff]  ;;  %341 = vst.msk [vmem:[#allocation2 + $0x20] sm:$0xff] %vm178_vm0, %v336_v41  ;;  %v413_v5 = vmul.f32 %v2108_v53, %v1876_v34  ;;  %v358_v8 = vadd.f32 %v354_v1, %v348_v9  ;;  %v374_v59 = vmul.f32 %v2088_v62, %v1835_v16  ;;  %v126_v2 = vadd.f32 %v1979_v47, %v2027_v39  ;;  %v2147_v9 = vld [vmem:[#allocation3 + $0xe0] sm:$0xff] }
  0x57   :  { %1545 = vmatmul.mubr.msk.f32.gmra.mxu0 %vm178_vm0, %v429_v52  ;;  %v327_v22 = vadd.f32 %v323_v6, %v317_v38  ;;  %v387_v58 = vadd.f32 %v383_v63, %v377_v49  ;;  %v142_v33 = vmul.f32 %v1857_v26, %v2117_v54  ;;  %v384_v16 = vmul.f32 %v2091_v24, %v1845_v20  ;;  %v2151_v63 = vld [vmem:[#allocation3 + $0xf0] sm:$0xff]  ;;  %v2154_v38 = vld [vmem:[#allocation3 + $0xb8] sm:$0xff] }
  0x58   :  { %v368_v34 = vadd.f32 %v364_v13, %v358_v8  ;;  %v394_v41 = vmul.f32 %v2102_v46, %v1868_v31  ;;  %v152_v6 = vmul.f32 %v1866_v30, %v2123_v18  ;;  %v136_v1 = vadd.f32 %v2045_v43, %v126_v2  ;;  %v2169_v8 = vld [vmem:[#allocation3 + $0xc8] sm:$0xff] }
  0x59   :  { %v337_v47 = vadd.f32 %v333_v60, %v327_v22  ;;  %v397_v39 = vadd.f32 %v393_v17, %v387_v58  ;;  %v107_v13 = vmul.f32 %v1813_v7, %v2132_v61  ;;  %v404_v31 = vmul.f32 %v2105_v40, %v1870_v32 }
  0x5a   :  { %v378_v20 = vadd.f32 %v374_v59, %v368_v34  ;;  %v113_v49 = vmul.f32 %v1823_v11, %v2139_v23  ;;  %v123_v60 = vmul.f32 %v1833_v15, %v2141_v4  ;;  %v414_v43 = vmul.f32 %v2108_v53, %v1881_v37  ;;  %v2173_v11 = vld [vmem:[#allocation3 + $0xd8] sm:$0xff]  ;;  %v2177_v37 = vld [vmem:[#allocation3 + $0xe8] sm:$0xff] }
  0x5b   :  { %342 = vst.msk [vmem:[#allocation2 + $0x28] sm:$0xff] %vm178_vm0, %v337_v47  ;;  %v407_v17 = vadd.f32 %v403_v3, %v397_v39  ;;  %v146_v52 = vadd.f32 %v142_v33, %v136_v1  ;;  %v162_v7 = vmul.f32 %v1879_v36, %v2147_v9  ;;  %v172_v32 = vmul.f32 %v1892_v42, %v2151_v63 }
  0x5c   :  { %v388_v59 = vadd.f32 %v384_v16, %v378_v20  ;;  %v117_v22 = vadd.f32 %v113_v49, %v107_v13  ;;  %v133_v15 = vmul.f32 %v1843_v19, %v2154_v38  ;;  %v187_v33 = vmul.f32 %v1911_v50, %v1861_v28 }
  0x5d   :  { %v430_v3 = vld [vmem:[#allocation2 + $0x20] sm:$0xff]  ;;  %v417_v58 = vadd.f32 %v413_v5, %v407_v17  ;;  %v156_v2 = vadd.f32 %v152_v6, %v146_v52  ;;  %v193_v34 = vmul.f32 %v1914_v51, %v1938_v0  ;;  %v143_v39 = vmul.f32 %v1857_v26, %v2169_v8  ;;  %v2189_v6 = vld [vmem:[#allocation3 + $0xf8] sm:$0xff] }
  0x5e   :  { %1547 = vmatprep.mubr.msk.f32.mxu0 %vm178_vm0, %v430_v3  ;;  %v398_v16 = vadd.f32 %v394_v41, %v388_v59  ;;  %v127_v47 = vadd.f32 %v123_v60, %v117_v22  ;;  %v203_v19 = vmul.f32 %v1923_v56, %v1954_v25  ;;  %v153_v1 = vmul.f32 %v1866_v30, %v2173_v11 }
  0x5f   :  { %422 = vst.msk [vmem:[#allocation2 + $0x30] sm:$0xff] %vm178_vm0, %v417_v58  ;;  %v166_v5 = vadd.f32 %v162_v7, %v156_v2  ;;  %v197_v13 = vadd.f32 %v193_v34, %v187_v33  ;;  %v213_v20 = vmul.f32 %v1926_v57, %v2020_v21  ;;  %v163_v26 = vmul.f32 %v1879_v36, %v2177_v37  ;;  %v2437_v34 = vld [vmem:[#allocation17_spill] sm:$0xff] }
  0x60   :  { %v408_v41 = vadd.f32 %v404_v31, %v398_v16  ;;  %v137_v49 = vadd.f32 %v133_v15, %v127_v47  ;;  %v223_v60 = vmul.f32 %v1943_v10, %v2117_v54  ;;  %v188_v7 = vmul.f32 %v1911_v50, %v2132_v61  ;;  %v2438_v47 = vld [vmem:[#allocation18_spill] sm:$0xff] }
  0x61   :  { %v176_v17 = vadd.f32 %v172_v32, %v166_v5  ;;  %v207_v52 = vadd.f32 %v203_v19, %v197_v13  ;;  %v194_v30 = vmul.f32 %v1914_v51, %v2139_v23  ;;  %v173_v31 = vmul.f32 %v1892_v42, %v2189_v6  ;;  %v2439_v5 = vld [vmem:[#allocation16_spill] sm:$0xff] }
  0x62   :  { %v431_v59 = vld [vmem:[#allocation2 + $0x28] sm:$0xff]  ;;  %v418_v22 = vadd.f32 %v414_v43, %v408_v41  ;;  %v147_v3 = vadd.f32 %v143_v39, %v137_v49  ;;  %v204_v36 = vmul.f32 %v1923_v56, %v2141_v4  ;;  %v233_v50 = vmul.f32 %v1946_v12, %v2123_v18 }
  0x63   :  { %1548 = vmatmul.mubr.msk.f32.gmra.mxu0 %vm178_vm0, %v431_v59  ;;  %181 = vst.msk [vmem:[#allocation2 + $0x40] sm:$0xff] %vm178_vm0, %v176_v17  ;;  %v217_v32 = vadd.f32 %v213_v20, %v207_v52  ;;  %v198_v15 = vadd.f32 %v194_v30, %v188_v7  ;;  %v214_v51 = vmul.f32 %v1926_v57, %v2154_v38 }
  0x64   :  { %423 = vst.msk [vmem:[#allocation2 + $0x38] sm:$0xff] %vm178_vm0, %v418_v22  ;;  %v157_v43 = vadd.f32 %v153_v1, %v147_v3  ;;  %v243_v42 = vmul.f32 %v1957_v27, %v2147_v9  ;;  %v224_v56 = vmul.f32 %v1943_v10, %v2169_v8  ;;  %v268_v58 = vmul.f32 %v1992_v55, %v1861_v28 }
  0x65   :  { %v227_v2 = vadd.f32 %v223_v60, %v217_v32  ;;  %v208_v33 = vadd.f32 %v204_v36, %v198_v15  ;;  %v274_v16 = vmul.f32 %v2437_v34, %v1938_v0  ;;  %v284_v57 = vmul.f32 %v2438_v47, %v1954_v25  ;;  %v2440_v60 = vld [vmem:[#allocation19_spill] sm:$0xff] }
  0x66   :  { %v432_v39 = vld [vmem:[#allocation2 + $0x30] sm:$0xff]  ;;  %v167_v19 = vadd.f32 %v163_v26, %v157_v43  ;;  %v253_v1 = vmul.f32 %v2439_v5, %v2151_v63  ;;  %v234_v13 = vmul.f32 %v1946_v12, %v2173_v11  ;;  %v244_v10 = vmul.f32 %v1957_v27, %v2177_v37 }
  0x67   :  { %1550 = vmatprep.mubr.msk.f32.mxu0 %vm178_vm0, %v432_v39  ;;  %v237_v20 = vadd.f32 %v233_v50, %v227_v2  ;;  %v218_v41 = vadd.f32 %v214_v51, %v208_v33  ;;  %v278_v49 = vadd.f32 %v274_v16, %v268_v58  ;;  %v294_v17 = vmul.f32 %v2440_v60, %v2020_v21  ;;  %v2441_v26 = vld [vmem:[#allocation20_spill] sm:$0xff] }
  0x68   :  { %v177_v52 = vadd.f32 %v173_v31, %v167_v19  ;;  %v304_v7 = vmul.f32 %v2441_v26, %v2117_v54  ;;  %v269_v30 = vmul.f32 %v1992_v55, %v2132_v61  ;;  %v275_v12 = vmul.f32 %v2437_v34, %v2139_v23 }
  0x69   :  { %v247_v59 = vadd.f32 %v243_v42, %v237_v20  ;;  %v228_v27 = vadd.f32 %v224_v56, %v218_v41  ;;  %v288_v22 = vadd.f32 %v284_v57, %v278_v49  ;;  %v285_v3 = vmul.f32 %v2438_v47, %v2141_v4 }
  0x6a   :  { %v434_v36 = vld [vmem:[#allocation2 + $0x40] sm:$0xff]  ;;  %182 = vst.msk [vmem:[#allocation2 + $0x48] sm:$0xff] %vm178_vm0, %v177_v52  ;;  %v254_v31 = vmul.f32 %v2439_v5, %v2189_v6  ;;  %v314_v32 = vmul.f32 %v2032_v44, %v2123_v18  ;;  %v279_v50 = vadd.f32 %v275_v12, %v269_v30  ;;  %v295_v55 = vmul.f32 %v2440_v60, %v2154_v38 }
  0x6b   :  { %v433_v15 = vld [vmem:[#allocation2 + $0x38] sm:$0xff]  ;;  %v257_v51 = vadd.f32 %v253_v1, %v247_v59  ;;  %v238_v43 = vadd.f32 %v234_v13, %v228_v27  ;;  %v298_v42 = vadd.f32 %v294_v17, %v288_v22  ;;  %v324_v56 = vmul.f32 %v2035_v45, %v2147_v9 }
  0x6c   :  { %1551 = vmatmul.mubr.msk.f32.gmra.mxu0 %vm178_vm0, %v433_v15  ;;  %v289_v58 = vadd.f32 %v285_v3, %v279_v50  ;;  %v305_v2 = vmul.f32 %v2441_v26, %v2169_v8  ;;  %v349_v33 = vmul.f32 %v2070_v48, %v1861_v28  ;;  %v355_v34 = vmul.f32 %v2073_v35, %v1938_v0  ;;  %v2313_v50 = vld [vmem:[#allocation9 + $0x8] sm:$0xff]  ;;  %v2321_v15 = vld [vmem:[#allocation9 + $0x18] sm:$0xff] }
  0x6d   :  { %1553 = vmatprep.mubr.msk.f32.mxu0 %vm178_vm0, %v434_v36  ;;  %262 = vst.msk [vmem:[#allocation2 + $0x50] sm:$0xff] %vm178_vm0, %v257_v51  ;;  %v248_v16 = vadd.f32 %v244_v10, %v238_v43  ;;  %v308_v47 = vadd.f32 %v304_v7, %v298_v42  ;;  %v334_v57 = vmul.f32 %v2062_v14, %v2151_v63 }
  0x6e   :  { %v365_v39 = vmul.f32 %v2076_v29, %v1954_v25  ;;  %v299_v19 = vadd.f32 %v295_v55, %v289_v58  ;;  %v315_v5 = vmul.f32 %v2032_v44, %v2173_v11  ;;  %v359_v28 = vadd.f32 %v355_v34, %v349_v33  ;;  %v2315_v55 = vld [vmem:[#allocation9 + $0x10] sm:$0xff] }
  0x6f   :  { %v375_v0 = vmul.f32 %v2088_v62, %v2020_v21  ;;  %v258_v1 = vadd.f32 %v254_v31, %v248_v16  ;;  %v318_v13 = vadd.f32 %v314_v32, %v308_v47  ;;  %v325_v10 = vmul.f32 %v2035_v45, %v2177_v37  ;;  %v2307_v32 = vld [vmem:[#allocation9] sm:$0xff] }
  0x70   :  { %v385_v20 = vmul.f32 %v2091_v24, %v2117_v54  ;;  %v309_v41 = vadd.f32 %v305_v2, %v299_v19  ;;  %v369_v49 = vadd.f32 %v365_v39, %v359_v28  ;;  %v350_v25 = vmul.f32 %v2070_v48, %v2132_v61  ;;  %1569 = vmatprep.mubr.msk.f32.mxu1 %vm178_vm0, %v2307_v32 }
  0x71   :  { %v356_v44 = vmul.f32 %v2073_v35, %v2139_v23  ;;  %v435_v60 = vld [vmem:[#allocation2 + $0x48] sm:$0xff]  ;;  %263 = vst.msk [vmem:[#allocation2 + $0x58] sm:$0xff] %vm178_vm0, %v258_v1  ;;  %v328_v21 = vadd.f32 %v324_v56, %v318_v13  ;;  %v335_v17 = vmul.f32 %v2062_v14, %v2189_v6  ;;  %v395_v45 = vmul.f32 %v2102_v46, %v2123_v18 }
  0x72   :  { %v366_v54 = vmul.f32 %v2076_v29, %v2141_v4  ;;  %1554 = vmatmul.mubr.msk.f32.gmra.mxu0 %vm178_vm0, %v435_v60  ;;  %v319_v52 = vadd.f32 %v315_v5, %v309_v41  ;;  %v379_v48 = vadd.f32 %v375_v0, %v369_v49  ;;  %v376_v35 = vmul.f32 %v2088_v62, %v2154_v38 }
  0x73   :  { %v360_v61 = vadd.f32 %v356_v44, %v350_v25  ;;  %v338_v23 = vadd.f32 %v334_v57, %v328_v21  ;;  %v405_v26 = vmul.f32 %v2105_v40, %v2147_v9  ;;  %v386_v18 = vmul.f32 %v2091_v24, %v2169_v8 }
  0x74   :  { %v436_v7 = vld [vmem:[#allocation2 + $0x50] sm:$0xff]  ;;  %v329_v14 = vadd.f32 %v325_v10, %v319_v52  ;;  %v389_v30 = vadd.f32 %v385_v20, %v379_v48  ;;  %v415_v29 = vmul.f32 %v2108_v53, %v2151_v63  ;;  %v396_v9 = vmul.f32 %v2102_v46, %v2173_v11 }
  0x75   :  { %v370_v12 = vadd.f32 %v366_v54, %v360_v61  ;;  %1556 = vmatprep.mubr.msk.f32.mxu0 %vm178_vm0, %v436_v7  ;;  %343 = vst.msk [vmem:[#allocation2 + $0x60] sm:$0xff] %vm178_vm0, %v338_v23  ;;  %v406_v24 = vmul.f32 %v2105_v40, %v2177_v37  ;;  %v416_v63 = vmul.f32 %v2108_v53, %v2189_v6 }
  0x76   :  { %v339_v4 = vadd.f32 %v335_v17, %v329_v14  ;;  %v399_v62 = vadd.f32 %v395_v45, %v389_v30 }
  0x77   :  { %v380_v38 = vadd.f32 %v376_v35, %v370_v12 }
  0x78   :  { %v437_v59 = vld [vmem:[#allocation2 + $0x58] sm:$0xff]  ;;  %344 = vst.msk [vmem:[#allocation2 + $0x68] sm:$0xff] %vm178_vm0, %v339_v4  ;;  %v409_v27 = vadd.f32 %v405_v26, %v399_v62 }
  0x79   :  { %v390_v22 = vadd.f32 %v386_v18, %v380_v38  ;;  %1557 = vmatmul.mubr.msk.f32.gmra.mxu0 %vm178_vm0, %v437_v59 }
  0x7a   :  { %v419_v8 = vadd.f32 %v415_v29, %v409_v27 }
  0x7b   :  { %v400_v3 = vadd.f32 %v396_v9, %v390_v22 }
  0x7c   :  { %v438_v36 = vld [vmem:[#allocation2 + $0x60] sm:$0xff]  ;;  %424 = vst.msk [vmem:[#allocation2 + $0x70] sm:$0xff] %vm178_vm0, %v419_v8 }
  0x7d   :  { %v410_v31 = vadd.f32 %v406_v24, %v400_v3  ;;  %1559 = vmatprep.mubr.msk.f32.mxu0 %vm178_vm0, %v438_v36 }
  0x7f   :  { %v420_v46 = vadd.f32 %v416_v63, %v410_v31  ;;  %v439_v11 = vld [vmem:[#allocation2 + $0x68] sm:$0xff] }
  0x80   :  { %1560 = vmatmul.mubr.msk.f32.gmra.mxu0 %vm178_vm0, %v439_v11 }
  0x81   :  { %425 = vst.msk [vmem:[#allocation2 + $0x78] sm:$0xff] %vm178_vm0, %v420_v46 }
  0x83   :  { %v440_v40 = vld [vmem:[#allocation2 + $0x70] sm:$0xff] }
  0x84   :  { %1562 = vmatprep.mubr.msk.f32.mxu0 %vm178_vm0, %v440_v40 }
  0x88   :  { %v441_v37 = vld [vmem:[#allocation2 + $0x78] sm:$0xff] }
  0x89   :  { %1563 = vmatmul.mubr.msk.f32.gmra.mxu0 %vm178_vm0, %v441_v37 }
  0x8a   :  { %1609 = vmatprep.mubr.msk.f32.mxu0 %vm178_vm0, %v2307_v32 }
 0x10d   :  { %v1543_v53 = vpop.f32.mrf.mxu0 }
 0x10e   :  { %1565 = vmatprep.subr.mxu1 %v1543_v53 }
 0x10f   :  { %v558_v6 = vpop.f32.mrf.mxu0  ;;  %1566 = vmatpush3.msra.mxu1 %v1543_v53 }
 0x110   :  { %1567 = vmatprep.subr.mxu1 %v558_v6 }
 0x111   :  { %1568 = vmatpush3.msra.mxu1 %v558_v6 }
 0x112   :  { %1570 = vmatmul.mubr.msk.f32.vlgmr.msra.gmra.mxu1 %vm178_vm0, %v2313_v50 }
 0x113   :  { %1572 = vmatprep.mubr.msk.f32.mxu1 %vm178_vm0, %v2315_v55 }
 0x116   :  { %1573 = vmatmul.mubr.msk.f32.gmra.mxu1 %vm178_vm0, %v2321_v15 }
 0x117   :  { %v1546_v51 = vpop.f32.mrf.mxu0  ;;  %1579 = vmatprep.mubr.msk.f32.mxu1 %vm178_vm0, %v2307_v32 }
 0x118   :  { %1575 = vmatprep.subr.mxu1 %v1546_v51 }
 0x119   :  { %v568_v43 = vpop.f32.mrf.mxu0  ;;  %1576 = vmatpush3.msra.mxu1 %v1546_v51 }
 0x11a   :  { %1577 = vmatprep.subr.mxu1 %v568_v43 }
 0x11b   :  { %1578 = vmatpush3.msra.mxu1 %v568_v43 }
 0x11c   :  { %1580 = vmatmul.mubr.msk.f32.vlgmr.msra.gmra.mxu1 %vm178_vm0, %v2313_v50 }
 0x11d   :  { %1582 = vmatprep.mubr.msk.f32.mxu1 %vm178_vm0, %v2315_v55 }
 0x120   :  { %1583 = vmatmul.mubr.msk.f32.gmra.mxu1 %vm178_vm0, %v2321_v15 }
 0x121   :  { %1589 = vmatprep.mubr.msk.f32.mxu1 %vm178_vm0, %v2307_v32 }
 0x123   :  { %v1549_v42 = vpop.f32.mrf.mxu0 }
 0x124   :  { %1585 = vmatprep.subr.mxu1 %v1549_v42 }
 0x125   :  { %v578_v56 = vpop.f32.mrf.mxu0  ;;  %1586 = vmatpush3.msra.mxu1 %v1549_v42 }
 0x126   :  { %1587 = vmatprep.subr.mxu1 %v578_v56 }
 0x127   :  { %1588 = vmatpush3.msra.mxu1 %v578_v56 }
 0x128   :  { %1590 = vmatmul.mubr.msk.f32.vlgmr.msra.gmra.mxu1 %vm178_vm0, %v2313_v50 }
 0x129   :  { %1592 = vmatprep.mubr.msk.f32.mxu1 %vm178_vm0, %v2315_v55 }
 0x12c   :  { %v1552_v58 = vpop.f32.mrf.mxu0  ;;  %1593 = vmatmul.mubr.msk.f32.gmra.mxu1 %vm178_vm0, %v2321_v15 }
 0x12d   :  { %1595 = vmatprep.subr.mxu1 %v1552_v58  ;;  %1599 = vmatprep.mubr.msk.f32.mxu1 %vm178_vm0, %v2307_v32 }
 0x12e   :  { %v588_v2 = vpop.f32.mrf.mxu0  ;;  %1596 = vmatpush3.msra.mxu1 %v1552_v58 }
 0x12f   :  { %1597 = vmatprep.subr.mxu1 %v588_v2 }
 0x130   :  { %1598 = vmatpush3.msra.mxu1 %v588_v2 }
 0x131   :  { %1600 = vmatmul.mubr.msk.f32.vlgmr.msra.gmra.mxu1 %vm178_vm0, %v2313_v50 }
 0x132   :  { %v1555_v33 = vpop.f32.mrf.mxu0  ;;  %1602 = vmatprep.mubr.msk.f32.mxu1 %vm178_vm0, %v2315_v55 }
 0x133   :  { %1605 = vmatprep.subr.mxu0 %v1555_v33 }
 0x134   :  { %v598_v34 = vpop.f32.mrf.mxu0  ;;  %1606 = vmatpush3.msra.mxu0 %v1555_v33 }
 0x135   :  { %1607 = vmatprep.subr.mxu0 %v598_v34  ;;  %1603 = vmatmul.mubr.msk.f32.gmra.mxu1 %vm178_vm0, %v2321_v15 }
 0x136   :  { %1608 = vmatpush3.msra.mxu0 %v598_v34  ;;  %1619 = vmatprep.mubr.msk.f32.mxu1 %vm178_vm0, %v2307_v32 }
 0x137   :  { %1610 = vmatmul.mubr.msk.f32.vlgmr.msra.gmra.mxu0 %vm178_vm0, %v2313_v50 }
 0x138   :  { %1612 = vmatprep.mubr.msk.f32.mxu0 %vm178_vm0, %v2315_v55 }
 0x139   :  { %v1558_v16 = vpop.f32.mrf.mxu0 }
 0x13a   :  { %1615 = vmatprep.subr.mxu1 %v1558_v16 }
 0x13b   :  { %v608_v47 = vpop.f32.mrf.mxu0  ;;  %1616 = vmatpush3.msra.mxu1 %v1558_v16  ;;  %1613 = vmatmul.mubr.msk.f32.gmra.mxu0 %vm178_vm0, %v2321_v15 }
 0x13c   :  { %1617 = vmatprep.subr.mxu1 %v608_v47  ;;  %1629 = vmatprep.mubr.msk.f32.mxu0 %vm178_vm0, %v2307_v32 }
 0x13d   :  { %1618 = vmatpush3.msra.mxu1 %v608_v47 }
 0x13e   :  { %1620 = vmatmul.mubr.msk.f32.vlgmr.msra.gmra.mxu1 %vm178_vm0, %v2313_v50 }
 0x13f   :  { %1622 = vmatprep.mubr.msk.f32.mxu1 %vm178_vm0, %v2315_v55 }
 0x140   :  { %v1561_v57 = vpop.f32.mrf.mxu0 }
 0x141   :  { %1625 = vmatprep.subr.mxu0 %v1561_v57 }
 0x142   :  { %v618_v39 = vpop.f32.mrf.mxu0  ;;  %1626 = vmatpush3.msra.mxu0 %v1561_v57  ;;  %1623 = vmatmul.mubr.msk.f32.gmra.mxu1 %vm178_vm0, %v2321_v15 }
 0x143   :  { %1627 = vmatprep.subr.mxu0 %v618_v39  ;;  %1639 = vmatprep.mubr.msk.f32.mxu1 %vm178_vm0, %v2307_v32 }
 0x144   :  { %1628 = vmatpush3.msra.mxu0 %v618_v39 }
 0x145   :  { %1630 = vmatmul.mubr.msk.f32.vlgmr.msra.gmra.mxu0 %vm178_vm0, %v2313_v50 }
 0x146   :  { %1632 = vmatprep.mubr.msk.f32.mxu0 %vm178_vm0, %v2315_v55 }
 0x149   :  { %v1564_v19 = vpop.f32.mrf.mxu0  ;;  %1633 = vmatmul.mubr.msk.f32.gmra.mxu0 %vm178_vm0, %v2321_v15 }
 0x14a   :  { %1635 = vmatprep.subr.mxu1 %v1564_v19 }
 0x14b   :  { %v628_v5 = vpop.f32.mrf.mxu0  ;;  %1636 = vmatpush3.msra.mxu1 %v1564_v19 }
 0x14c   :  { %1637 = vmatprep.subr.mxu1 %v628_v5 }
 0x14d   :  { %1638 = vmatpush3.msra.mxu1 %v628_v5 }
 0x14e   :  { %1640 = vmatmul.mubr.msk.f32.vlgmr.msra.gmra.mxu1 %vm178_vm0, %v2313_v50 }
 0x14f   :  { %1642 = vmatprep.mubr.msk.f32.mxu1 %vm178_vm0, %v2315_v55 }
 0x152   :  { %1643 = vmatmul.mubr.msk.f32.gmra.mxu1 %vm178_vm0, %v2321_v15 }
 0x1d2   :  { %v1571_v28 = vpop.f32.mrf.mxu1 }
 0x1d3   :  { %740 = vst.msk [vmem:[#allocation11 + $0x8] sm:$0xff] %vm738_vm1, %v1571_v28 }
 0x1d4   :  { %v719_v0 = vpop.f32.mrf.mxu1 }
 0x1d5   :  { %739 = vst.msk [vmem:[#allocation11] sm:$0xff] %vm738_vm1, %v719_v0 }
 0x1d6   :  { %v1574_v1 = vpop.f32.mrf.mxu1 }
 0x1d7   :  { %742 = vst.msk [vmem:[#allocation11 + $0x18] sm:$0xff] %vm738_vm1, %v1574_v1 }
 0x1d8   :  { %v729_v13 = vpop.f32.mrf.mxu1 }
 0x1d9   :  { %741 = vst.msk [vmem:[#allocation11 + $0x10] sm:$0xff] %vm738_vm1, %v729_v13 }
 0x1dc   :  { %v1581_v10 = vpop.f32.mrf.mxu1 }
 0x1dd   :  { %830 = vst.msk [vmem:[#allocation11 + $0x28] sm:$0xff] %vm738_vm1, %v1581_v10 }
 0x1de   :  { %v809_v20 = vpop.f32.mrf.mxu1 }
 0x1df   :  { %829 = vst.msk [vmem:[#allocation11 + $0x20] sm:$0xff] %vm738_vm1, %v809_v20 }
 0x1e0   :  { %v1584_v41 = vpop.f32.mrf.mxu1 }
 0x1e1   :  { %832 = vst.msk [vmem:[#allocation11 + $0x38] sm:$0xff] %vm738_vm1, %v1584_v41 }
 0x1e2   :  { %v819_v49 = vpop.f32.mrf.mxu1 }
 0x1e3   :  { %831 = vst.msk [vmem:[#allocation11 + $0x30] sm:$0xff] %vm738_vm1, %v819_v49 }
 0x1e8   :  { %v1591_v25 = vpop.f32.mrf.mxu1 }
 0x1e9   :  { %920 = vst.msk [vmem:[#allocation11 + $0x48] sm:$0xff] %vm738_vm1, %v1591_v25 }
 0x1ea   :  { %v899_v44 = vpop.f32.mrf.mxu1 }
 0x1eb   :  { %919 = vst.msk [vmem:[#allocation11 + $0x40] sm:$0xff] %vm738_vm1, %v899_v44 }
 0x1ec   :  { %v1594_v60 = vpop.f32.mrf.mxu1 }
 0x1ed   :  { %922 = vst.msk [vmem:[#allocation11 + $0x58] sm:$0xff] %vm738_vm1, %v1594_v60 }
 0x1ee   :  { %v909_v21 = vpop.f32.mrf.mxu1 }
 0x1ef   :  { %921 = vst.msk [vmem:[#allocation11 + $0x50] sm:$0xff] %vm738_vm1, %v909_v21 }
 0x1f1   :  { %v1601_v17 = vpop.f32.mrf.mxu1 }
 0x1f2   :  { %1010 = vst.msk [vmem:[#allocation11 + $0x68] sm:$0xff] %vm738_vm1, %v1601_v17 }
 0x1f3   :  { %v989_v45 = vpop.f32.mrf.mxu1 }
 0x1f4   :  { %1009 = vst.msk [vmem:[#allocation11 + $0x60] sm:$0xff] %vm738_vm1, %v989_v45 }
 0x1f5   :  { %v1604_v54 = vpop.f32.mrf.mxu1 }
 0x1f6   :  { %1012 = vst.msk [vmem:[#allocation11 + $0x78] sm:$0xff] %vm738_vm1, %v1604_v54 }
 0x1f7   :  { %v999_v52 = vpop.f32.mrf.mxu1  ;;  %v1611_v48 = vpop.f32.mrf.mxu0 }
 0x1f8   :  { %1011 = vst.msk [vmem:[#allocation11 + $0x70] sm:$0xff] %vm738_vm1, %v999_v52  ;;  %1100 = vst.msk [vmem:[#allocation11 + $0x88] sm:$0xff] %vm738_vm1, %v1611_v48 }
 0x1f9   :  { %v1079_v61 = vpop.f32.mrf.mxu0 }
 0x1fa   :  { %1099 = vst.msk [vmem:[#allocation11 + $0x80] sm:$0xff] %vm738_vm1, %v1079_v61 }
 0x1fb   :  { %v1614_v35 = vpop.f32.mrf.mxu0 }
 0x1fc   :  { %1102 = vst.msk [vmem:[#allocation11 + $0x98] sm:$0xff] %vm738_vm1, %v1614_v35 }
 0x1fd   :  { %v1089_v23 = vpop.f32.mrf.mxu0 }
 0x1fe   :  { %v1621_v26 = vpop.f32.mrf.mxu1  ;;  %1101 = vst.msk [vmem:[#allocation11 + $0x90] sm:$0xff] %vm738_vm1, %v1089_v23 }
 0x1ff   :  { %1190 = vst.msk [vmem:[#allocation11 + $0xa8] sm:$0xff] %vm738_vm1, %v1621_v26 }
 0x200   :  { %v1169_v7 = vpop.f32.mrf.mxu1 }
 0x201   :  { %1189 = vst.msk [vmem:[#allocation11 + $0xa0] sm:$0xff] %vm738_vm1, %v1169_v7 }
 0x202   :  { %v1624_v14 = vpop.f32.mrf.mxu1 }
 0x203   :  { %1192 = vst.msk [vmem:[#allocation11 + $0xb8] sm:$0xff] %vm738_vm1, %v1624_v14 }
 0x204   :  { %v1179_v30 = vpop.f32.mrf.mxu1 }
 0x205   :  { %1191 = vst.msk [vmem:[#allocation11 + $0xb0] sm:$0xff] %vm738_vm1, %v1179_v30  ;;  %v1631_v12 = vpop.f32.mrf.mxu0 }
 0x206   :  { %1280 = vst.msk [vmem:[#allocation11 + $0xc8] sm:$0xff] %vm738_vm1, %v1631_v12 }
 0x207   :  { %v1259_v18 = vpop.f32.mrf.mxu0 }
 0x208   :  { %1279 = vst.msk [vmem:[#allocation11 + $0xc0] sm:$0xff] %vm738_vm1, %v1259_v18 }
 0x209   :  { %v1634_v29 = vpop.f32.mrf.mxu0 }
 0x20a   :  { %1282 = vst.msk [vmem:[#allocation11 + $0xd8] sm:$0xff] %vm738_vm1, %v1634_v29 }
 0x20b   :  { %v1269_v4 = vpop.f32.mrf.mxu0 }
 0x20c   :  { %1281 = vst.msk [vmem:[#allocation11 + $0xd0] sm:$0xff] %vm738_vm1, %v1269_v4 }
 0x20e   :  { %v1641_v62 = vpop.f32.mrf.mxu1 }
 0x20f   :  { %1370 = vst.msk [vmem:[#allocation11 + $0xe8] sm:$0xff] %vm738_vm1, %v1641_v62 }
 0x210   :  { %v1349_v38 = vpop.f32.mrf.mxu1 }
 0x211   :  { %1369 = vst.msk [vmem:[#allocation11 + $0xe0] sm:$0xff] %vm738_vm1, %v1349_v38 }
 0x212   :  { %v1644_v9 = vpop.f32.mrf.mxu1 }
 0x213   :  { %1372 = vst.msk [vmem:[#allocation11 + $0xf8] sm:$0xff] %vm738_vm1, %v1644_v9 }
 0x214   :  { %v1359_v59 = vpop.f32.mrf.mxu1 }
 0x215   :  { %1371 = vst.msk [vmem:[#allocation11 + $0xf0] sm:$0xff] %vm738_vm1, %v1359_v59 }
 0x216   :  { %1731 = shalt.err (!%p1728_p5)
}
 0x217   :  { %1384 = dma.vmem_to_hbm [thread:$0]  %s1379_s10, 4096, %s2421_s4, [#allocation5], %s1750_s20, %s1750_s20, %s1751_s21  }
 0x218   :  { %1746 = dma.done.wait [#allocation5], 4096  }
 0x219   :  { %1747 = vsyncadd [#allocation5], 4294963200 }
 0x21a   :  { %1388 = vsyncpa [#allocation4], 1 }
 0x21b   :  { %1389 = vsyncpa [#allocation8], 1 }
 0x21c   :  { %1390 = vsyncpa [#allocation5], 1 }
 0x21d   :  { %1391 = vsyncpa [#allocation6], 1 }

</bundles_post_ra>
